<compile_context>
chip_gen: v5e
topology: v5e:2x2
jax: 0.10.0
libtpu: 0.0.40
codegen_flags: <defaults>
</compile_context>

<pallas_src>
import functools

import jax
import jax.numpy as jnp
from jax import lax
from jax.experimental import pallas as pl
from jax.experimental.pallas import tpu as pltpu


# ------------------------------ fused kernel ---------------------------------
def _fused_conv_attn_se_kernel(W, x_ref, mask_ref, wc_ref, bc_ref,
                               wqt_ref, wkt_ref, wvt_ref,
                               w1t_ref, b1_ref, w2t_ref, b2_ref, o_ref):
    # x_ref   : (1, Cin, S)  one image, channel-major, S = H*W in lanes (f32)
    # mask_ref: (9, S)       per-tap zero-padding validity mask (f32, 0/1)
    # wc_ref  : (Cout, 9*Cin) im2col conv weights, bf16 (row order: tap-major, cin-minor)
    # bc_ref  : (Cout, 1) f32
    # wqt/wkt/wvt_ref: (C, C) bf16, already transposed ([out_ch, in_ch]); 1/sqrt(C) in wq
    # w1t_ref : (Cr, C) f32, b1_ref: (Cr, 1) f32, w2t_ref: (C, Cr) f32, b2_ref: (C, 1) f32
    # o_ref   : (1, Cout, S) f32
    x = x_ref[0]                                          # (Cin, S) f32
    S = x.shape[1]

    # ----- conv 3x3, stride 1, pad 1 : single im2col matmul, (Cout, S) output -----
    taps = []
    for kh in range(3):
        for kw in range(3):
            dh, dw = kh - 1, kw - 1
            t = kh * 3 + kw
            if dh == 0 and dw == 0:
                taps.append(x)
                continue
            d = dh * W + dw
            # rolled[:, s] == x[:, (s + d) % S]  (XLU lane rotation, no relayout reshape)
            rolled = pltpu.roll(x, (-d) % S, 1)
            taps.append(rolled * mask_ref[t:t + 1, :])    # zero-padding semantics
    patch = jnp.concatenate(taps, axis=0)                 # (9*Cin, S)

    acc = jnp.dot(wc_ref[...], patch.astype(jnp.bfloat16),
                  preferred_element_type=jnp.float32)     # (Cout, S)
    h0 = jnp.maximum(acc + bc_ref[...], 0.0)              # conv + bias + ReLU

    # ----- single-head spatial self-attention over the S tokens, + residual -----
    xb = h0.astype(jnp.bfloat16)
    q = jnp.dot(wqt_ref[...], xb, preferred_element_type=jnp.float32)   # (C, S), scaled
    k = jnp.dot(wkt_ref[...], xb, preferred_element_type=jnp.float32)   # (C, S)
    v = jnp.dot(wvt_ref[...], xb, preferred_element_type=jnp.float32)   # (C, S)

    # scores[i, j] = sum_c q[c, i] * k[c, j]   (contract channel dim, no explicit .T)
    s = lax.dot_general(q.astype(jnp.bfloat16), k.astype(jnp.bfloat16),
                        (((0,), (0,)), ((), ())),
                        preferred_element_type=jnp.float32)              # (S, S)
    s = s - jnp.max(s, axis=-1, keepdims=True)
    p = jnp.exp(s)
    p = p * pl.reciprocal(jnp.sum(p, axis=-1, keepdims=True), approx=True)

    # attn[c, i] = sum_j v[c, j] * p[i, j]
    attn = lax.dot_general(v.astype(jnp.bfloat16), p.astype(jnp.bfloat16),
                           (((1,), (1,)), ((), ())),
                           preferred_element_type=jnp.float32)           # (C, S)
    h1 = h0 + attn                                                       # residual

    # ----- squeeze-excite: mean over tokens -> FC -> ReLU -> FC -> sigmoid -> scale -----
    sq = jnp.mean(h1, axis=-1, keepdims=True)                            # (C, 1)
    hh = jnp.maximum(jnp.dot(w1t_ref[...], sq,
                             preferred_element_type=jnp.float32) + b1_ref[...], 0.0)  # (Cr,1)
    g = jax.nn.sigmoid(jnp.dot(w2t_ref[...], hh,
                               preferred_element_type=jnp.float32) + b2_ref[...])      # (C,1)

    o_ref[...] = (h1 * g)[None]                                          # lane-dense store


# ------------------------------ parameter setup -------------------------------
def init_params(key, cin, cout, se_reduction=2):
    ks = jax.random.split(key, 6)

    def scale(fan_in):
        return 1.0 / jnp.sqrt(jnp.float32(fan_in))

    cr = max(1, cout // se_reduction)
    return dict(
        conv_w=jax.random.normal(ks[0], (3, 3, cin, cout), jnp.float32) * scale(9 * cin),
        conv_b=jnp.zeros((1, cout), jnp.float32),
        wq=jax.random.normal(ks[1], (cout, cout), jnp.float32) * scale(cout),
        wk=jax.random.normal(ks[2], (cout, cout), jnp.float32) * scale(cout),
        wv=jax.random.normal(ks[3], (cout, cout), jnp.float32) * scale(cout),
        se_w1=jax.random.normal(ks[4], (cout, cr), jnp.float32) * scale(cout),
        se_b1=jnp.zeros((1, cr), jnp.float32),
        se_w2=jax.random.normal(ks[5], (cr, cout), jnp.float32) * scale(cr),
        se_b2=jnp.zeros((1, cout), jnp.float32),
    )


# ---------------------------- full forward (eval) -----------------------------
@jax.jit
def conv_se_attention_block(x_nchw, params):
    x = x_nchw.astype(jnp.float32)
    N, Cin, H, W = x.shape
    S = H * W
    Cout = params["conv_w"].shape[-1]
    Cr = params["se_w1"].shape[-1]

    # One-time tiny weight re-layouts / casts (outside the kernel, negligible cost).
    #   conv HWIO (3,3,Cin,Cout) -> (Cout, 9*Cin), row order matches the im2col patch.
    wc = jnp.transpose(params["conv_w"], (3, 0, 1, 2)).reshape(Cout, 9 * Cin)
    wc = wc.astype(jnp.bfloat16)
    bc = params["conv_b"].reshape(Cout, 1)
    attn_scale = float(Cout) ** -0.5
    wqt = (params["wq"] * attn_scale).T.astype(jnp.bfloat16)   # fold 1/sqrt(C) into wq
    wkt = params["wk"].T.astype(jnp.bfloat16)
    wvt = params["wv"].T.astype(jnp.bfloat16)
    w1t = params["se_w1"].T                                    # (Cr, C)
    b1 = params["se_b1"].reshape(Cr, 1)
    w2t = params["se_w2"].T                                    # (C, Cr)
    b2 = params["se_b2"].reshape(Cout, 1)

    # Per-tap validity masks for zero padding (constant, computed once, tiny (9, S)).
    ys, xs = jnp.meshgrid(jnp.arange(H), jnp.arange(W), indexing="ij")
    ys = ys.reshape(1, S)
    xs = xs.reshape(1, S)
    mask_rows = []
    for kh in range(3):
        for kw in range(3):
            dh, dw = kh - 1, kw - 1
            valid = ((ys + dh >= 0) & (ys + dh < H) &
                     (xs + dw >= 0) & (xs + dw < W))
            mask_rows.append(valid)
    tap_mask = jnp.concatenate(mask_rows, axis=0).astype(jnp.float32)   # (9, S)

    x_flat = x.reshape(N, Cin, S)                          # NCHW -> (N, Cin, S), no transpose

    kernel = functools.partial(_fused_conv_attn_se_kernel, W)
    out = pl.pallas_call(
        kernel,
        out_shape=jax.ShapeDtypeStruct((N, Cout, S), jnp.float32),
        grid=(N,),
        in_specs=[
            pl.BlockSpec((1, Cin, S), lambda n: (n, 0, 0)),
            pl.BlockSpec((9, S), lambda n: (0, 0)),
            pl.BlockSpec((Cout, 9 * Cin), lambda n: (0, 0)),
            pl.BlockSpec((Cout, 1), lambda n: (0, 0)),
            pl.BlockSpec((Cout, Cout), lambda n: (0, 0)),
            pl.BlockSpec((Cout, Cout), lambda n: (0, 0)),
            pl.BlockSpec((Cout, Cout), lambda n: (0, 0)),
            pl.BlockSpec((Cr, Cout), lambda n: (0, 0)),
            pl.BlockSpec((Cr, 1), lambda n: (0, 0)),
            pl.BlockSpec((Cout, Cr), lambda n: (0, 0)),
            pl.BlockSpec((Cout, 1), lambda n: (0, 0)),
        ],
        out_specs=pl.BlockSpec((1, Cout, S), lambda n: (n, 0, 0)),
        compiler_params=pltpu.CompilerParams(dimension_semantics=("parallel",)),
    )(x_flat, tap_mask, wc, bc, wqt, wkt, wvt, w1t, b1, w2t, b2)

    return out.reshape(N, Cout, H, W)                      # (N, Cout, S) -> NCHW, no transpose


if __name__ == "__main__":
    key = jax.random.PRNGKey(0)
    kx, kp = jax.random.split(key)
    N, Cin, H, W = 2, 4, 16, 16
    Cout = 8
    x = jax.random.normal(kx, (N, Cin, H, W), jnp.float32)
    params = init_params(kp, Cin, Cout)

    out = conv_se_attention_block(x, params)
    jax.block_until_ready(out)

    assert out.shape == (N, Cout, H, W), out.shape
    assert jnp.all(jnp.isfinite(out))
    print("KERNEL_OK")
</pallas_src>

<mosaic_0001>
module attributes {stable_mosaic.version = 11 : i64} {
  func.func @_fused_conv_attn_se_kernel(%arg0: i32, %arg1: memref<1x4x256xf32, #tpu.memory_space<vmem>>, %arg2: memref<9x256xf32, #tpu.memory_space<vmem>>, %arg3: memref<8x36xbf16, #tpu.memory_space<vmem>>, %arg4: memref<8x1xf32, #tpu.memory_space<vmem>>, %arg5: memref<8x8xbf16, #tpu.memory_space<vmem>>, %arg6: memref<8x8xbf16, #tpu.memory_space<vmem>>, %arg7: memref<8x8xbf16, #tpu.memory_space<vmem>>, %arg8: memref<4x8xf32, #tpu.memory_space<vmem>>, %arg9: memref<4x1xf32, #tpu.memory_space<vmem>>, %arg10: memref<8x4xf32, #tpu.memory_space<vmem>>, %arg11: memref<8x1xf32, #tpu.memory_space<vmem>>, %arg12: memref<1x8x256xf32, #tpu.memory_space<vmem>>) attributes {dimension_semantics = [#tpu.dimension_semantics<parallel>], iteration_bounds = array<i64: 2>, scalar_prefetch = 0 : i64, scratch_operands = 0 : i64, tpu.core_type = #tpu.core_type<tc>, window_params = [{transform_indices = @transform_0, window_bounds = array<i64: 1, 4, 256>}, {pipeline_mode = #tpu.pipeline_mode<synchronous>, transform_indices = @transform_1, window_bounds = array<i64: 9, 256>}, {pipeline_mode = #tpu.pipeline_mode<synchronous>, transform_indices = @transform_2, window_bounds = array<i64: 8, 36>}, {pipeline_mode = #tpu.pipeline_mode<synchronous>, transform_indices = @transform_3, window_bounds = array<i64: 8, 1>}, {pipeline_mode = #tpu.pipeline_mode<synchronous>, transform_indices = @transform_4, window_bounds = array<i64: 8, 8>}, {pipeline_mode = #tpu.pipeline_mode<synchronous>, transform_indices = @transform_5, window_bounds = array<i64: 8, 8>}, {pipeline_mode = #tpu.pipeline_mode<synchronous>, transform_indices = @transform_6, window_bounds = array<i64: 8, 8>}, {pipeline_mode = #tpu.pipeline_mode<synchronous>, transform_indices = @transform_7, window_bounds = array<i64: 4, 8>}, {pipeline_mode = #tpu.pipeline_mode<synchronous>, transform_indices = @transform_8, window_bounds = array<i64: 4, 1>}, {pipeline_mode = #tpu.pipeline_mode<synchronous>, transform_indices = @transform_9, window_bounds = array<i64: 8, 4>}, {pipeline_mode = #tpu.pipeline_mode<synchronous>, transform_indices = @transform_10, window_bounds = array<i64: 8, 1>}, {transform_indices = @transform_11, window_bounds = array<i64: 1, 8, 256>}]} {
    %c0 = arith.constant 0 : index
    %c0_0 = arith.constant 0 : index
    %c0_1 = arith.constant 0 : index
    %0 = vector.load %arg1[%c0, %c0_0, %c0_1] : memref<1x4x256xf32, #tpu.memory_space<vmem>>, vector<1x4x256xf32>
    %1 = vector.shape_cast %0 : vector<1x4x256xf32> to vector<4x256xf32>
    %c17_i32 = arith.constant 17 : i32
    %2 = tpu.dynamic_rotate %1 by %c17_i32 dim 1 : vector<4x256xf32>, i32 -> vector<4x256xf32>
    %c0_2 = arith.constant 0 : index
    %c0_3 = arith.constant 0 : index
    %3 = vector.load %arg2[%c0_2, %c0_3] : memref<9x256xf32, #tpu.memory_space<vmem>>, vector<1x256xf32>
    %4 = vector.broadcast %3 : vector<1x256xf32> to vector<4x256xf32>
    %5 = arith.mulf %2, %4 : vector<4x256xf32>
    %c16_i32 = arith.constant 16 : i32
    %6 = tpu.dynamic_rotate %1 by %c16_i32 dim 1 : vector<4x256xf32>, i32 -> vector<4x256xf32>
    %c1 = arith.constant 1 : index
    %c0_4 = arith.constant 0 : index
    %7 = vector.load %arg2[%c1, %c0_4] : memref<9x256xf32, #tpu.memory_space<vmem>>, vector<1x256xf32>
    %8 = vector.broadcast %7 : vector<1x256xf32> to vector<4x256xf32>
    %9 = arith.mulf %6, %8 : vector<4x256xf32>
    %c15_i32 = arith.constant 15 : i32
    %10 = tpu.dynamic_rotate %1 by %c15_i32 dim 1 : vector<4x256xf32>, i32 -> vector<4x256xf32>
    %c2 = arith.constant 2 : index
    %c0_5 = arith.constant 0 : index
    %11 = vector.load %arg2[%c2, %c0_5] : memref<9x256xf32, #tpu.memory_space<vmem>>, vector<1x256xf32>
    %12 = vector.broadcast %11 : vector<1x256xf32> to vector<4x256xf32>
    %13 = arith.mulf %10, %12 : vector<4x256xf32>
    %c1_i32 = arith.constant 1 : i32
    %14 = tpu.dynamic_rotate %1 by %c1_i32 dim 1 : vector<4x256xf32>, i32 -> vector<4x256xf32>
    %c3 = arith.constant 3 : index
    %c0_6 = arith.constant 0 : index
    %15 = vector.load %arg2[%c3, %c0_6] : memref<9x256xf32, #tpu.memory_space<vmem>>, vector<1x256xf32>
    %16 = vector.broadcast %15 : vector<1x256xf32> to vector<4x256xf32>
    %17 = arith.mulf %14, %16 : vector<4x256xf32>
    %c255_i32 = arith.constant 255 : i32
    %18 = tpu.dynamic_rotate %1 by %c255_i32 dim 1 : vector<4x256xf32>, i32 -> vector<4x256xf32>
    %c5 = arith.constant 5 : index
    %c0_7 = arith.constant 0 : index
    %19 = vector.load %arg2[%c5, %c0_7] : memref<9x256xf32, #tpu.memory_space<vmem>>, vector<1x256xf32>
    %20 = vector.broadcast %19 : vector<1x256xf32> to vector<4x256xf32>
    %21 = arith.mulf %18, %20 : vector<4x256xf32>
    %c241_i32 = arith.constant 241 : i32
    %22 = tpu.dynamic_rotate %1 by %c241_i32 dim 1 : vector<4x256xf32>, i32 -> vector<4x256xf32>
    %c6 = arith.constant 6 : index
    %c0_8 = arith.constant 0 : index
    %23 = vector.load %arg2[%c6, %c0_8] : memref<9x256xf32, #tpu.memory_space<vmem>>, vector<1x256xf32>
    %24 = vector.broadcast %23 : vector<1x256xf32> to vector<4x256xf32>
    %25 = arith.mulf %22, %24 : vector<4x256xf32>
    %c240_i32 = arith.constant 240 : i32
    %26 = tpu.dynamic_rotate %1 by %c240_i32 dim 1 : vector<4x256xf32>, i32 -> vector<4x256xf32>
    %c7 = arith.constant 7 : index
    %c0_9 = arith.constant 0 : index
    %27 = vector.load %arg2[%c7, %c0_9] : memref<9x256xf32, #tpu.memory_space<vmem>>, vector<1x256xf32>
    %28 = vector.broadcast %27 : vector<1x256xf32> to vector<4x256xf32>
    %29 = arith.mulf %26, %28 : vector<4x256xf32>
    %c239_i32 = arith.constant 239 : i32
    %30 = tpu.dynamic_rotate %1 by %c239_i32 dim 1 : vector<4x256xf32>, i32 -> vector<4x256xf32>
    %c8 = arith.constant 8 : index
    %c0_10 = arith.constant 0 : index
    %31 = vector.load %arg2[%c8, %c0_10] : memref<9x256xf32, #tpu.memory_space<vmem>>, vector<1x256xf32>
    %32 = vector.broadcast %31 : vector<1x256xf32> to vector<4x256xf32>
    %33 = arith.mulf %30, %32 : vector<4x256xf32>
    %34 = tpu.concatenate %5, %9, %13, %17, %1, %21, %25, %29, %33 in 0 : vector<4x256xf32>, vector<4x256xf32>, vector<4x256xf32>, vector<4x256xf32>, vector<4x256xf32>, vector<4x256xf32>, vector<4x256xf32>, vector<4x256xf32>, vector<4x256xf32> -> vector<36x256xf32>
    %c0_11 = arith.constant 0 : index
    %c0_12 = arith.constant 0 : index
    %35 = vector.load %arg3[%c0_11, %c0_12] : memref<8x36xbf16, #tpu.memory_space<vmem>>, vector<8x36xbf16>
    %36 = arith.truncf %34 : vector<36x256xf32> to vector<36x256xbf16>
    %cst = arith.constant dense<0.000000e+00> : vector<8x256xf32>
    %37 = tpu.matmul %35, %36, %cst {dimension_numbers = #tpu.dot_dimension_numbers<[1], [0], [0], [1], [0, 0, 1, 1], [], []>} : vector<8x36xbf16>, vector<36x256xbf16>, vector<8x256xf32> -> vector<8x256xf32>
    %c0_13 = arith.constant 0 : index
    %c0_14 = arith.constant 0 : index
    %38 = vector.load %arg4[%c0_13, %c0_14] : memref<8x1xf32, #tpu.memory_space<vmem>>, vector<8x1xf32>
    %39 = vector.broadcast %38 : vector<8x1xf32> to vector<8x256xf32>
    %40 = arith.addf %37, %39 : vector<8x256xf32>
    %cst_15 = arith.constant 0.000000e+00 : f32
    %41 = vector.broadcast %cst_15 : f32 to vector<8x256xf32>
    %42 = arith.maximumf %40, %41 : vector<8x256xf32>
    %43 = arith.truncf %42 : vector<8x256xf32> to vector<8x256xbf16>
    %c0_16 = arith.constant 0 : index
    %c0_17 = arith.constant 0 : index
    %44 = vector.load %arg5[%c0_16, %c0_17] : memref<8x8xbf16, #tpu.memory_space<vmem>>, vector<8x8xbf16>
    %cst_18 = arith.constant dense<0.000000e+00> : vector<8x256xf32>
    %45 = tpu.matmul %44, %43, %cst_18 {dimension_numbers = #tpu.dot_dimension_numbers<[1], [0], [0], [1], [0, 0, 1, 1], [], []>} : vector<8x8xbf16>, vector<8x256xbf16>, vector<8x256xf32> -> vector<8x256xf32>
    %c0_19 = arith.constant 0 : index
    %c0_20 = arith.constant 0 : index
    %46 = vector.load %arg6[%c0_19, %c0_20] : memref<8x8xbf16, #tpu.memory_space<vmem>>, vector<8x8xbf16>
    %cst_21 = arith.constant dense<0.000000e+00> : vector<8x256xf32>
    %47 = tpu.matmul %46, %43, %cst_21 {dimension_numbers = #tpu.dot_dimension_numbers<[1], [0], [0], [1], [0, 0, 1, 1], [], []>} : vector<8x8xbf16>, vector<8x256xbf16>, vector<8x256xf32> -> vector<8x256xf32>
    %c0_22 = arith.constant 0 : index
    %c0_23 = arith.constant 0 : index
    %48 = vector.load %arg7[%c0_22, %c0_23] : memref<8x8xbf16, #tpu.memory_space<vmem>>, vector<8x8xbf16>
    %cst_24 = arith.constant dense<0.000000e+00> : vector<8x256xf32>
    %49 = tpu.matmul %48, %43, %cst_24 {dimension_numbers = #tpu.dot_dimension_numbers<[1], [0], [0], [1], [0, 0, 1, 1], [], []>} : vector<8x8xbf16>, vector<8x256xbf16>, vector<8x256xf32> -> vector<8x256xf32>
    %50 = arith.truncf %45 : vector<8x256xf32> to vector<8x256xbf16>
    %51 = arith.truncf %47 : vector<8x256xf32> to vector<8x256xbf16>
    %cst_25 = arith.constant dense<0.000000e+00> : vector<256x256xf32>
    %52 = tpu.matmul %50, %51, %cst_25 {dimension_numbers = #tpu.dot_dimension_numbers<[0], [0], [1], [1], [0, 1, 1, 1], [], []>} : vector<8x256xbf16>, vector<8x256xbf16>, vector<256x256xf32> -> vector<256x256xf32>
    %cst_26 = arith.constant dense<0xFF800000> : vector<256xf32>
    %53 = vector.multi_reduction <maximumf>, %52, %cst_26 [1] : vector<256x256xf32> to vector<256xf32>
    %54 = vector.shape_cast %53 : vector<256xf32> to vector<256x1xf32>
    %55 = vector.broadcast %54 : vector<256x1xf32> to vector<256x256xf32>
    %56 = arith.subf %52, %55 : vector<256x256xf32>
    %57 = math.exp %56 : vector<256x256xf32>
    %cst_27 = arith.constant dense<0.000000e+00> : vector<256xf32>
    %58 = vector.multi_reduction <add>, %57, %cst_27 [1] : vector<256x256xf32> to vector<256xf32>
    %59 = vector.shape_cast %58 : vector<256xf32> to vector<256x1xf32>
    %60 = tpu.reciprocal %59 {approx = true} : vector<256x1xf32> -> vector<256x1xf32>
    %61 = vector.broadcast %60 : vector<256x1xf32> to vector<256x256xf32>
    %62 = arith.mulf %57, %61 : vector<256x256xf32>
    %63 = arith.truncf %49 : vector<8x256xf32> to vector<8x256xbf16>
    %64 = arith.truncf %62 : vector<256x256xf32> to vector<256x256xbf16>
    %cst_28 = arith.constant dense<0.000000e+00> : vector<8x256xf32>
    %65 = tpu.matmul %63, %64, %cst_28 {dimension_numbers = #tpu.dot_dimension_numbers<[1], [1], [0], [0], [0, 0, 1, 0], [], []>} : vector<8x256xbf16>, vector<256x256xbf16>, vector<8x256xf32> -> vector<8x256xf32>
    %66 = arith.addf %42, %65 : vector<8x256xf32>
    %cst_29 = arith.constant dense<0.000000e+00> : vector<8xf32>
    %67 = vector.multi_reduction <add>, %66, %cst_29 [1] : vector<8x256xf32> to vector<8xf32>
    %68 = vector.shape_cast %67 : vector<8xf32> to vector<8x1xf32>
    %cst_30 = arith.constant 2.560000e+02 : f32
    %69 = vector.broadcast %cst_30 : f32 to vector<8x1xf32>
    %70 = arith.divf %68, %69 : vector<8x1xf32>
    %c0_31 = arith.constant 0 : index
    %c0_32 = arith.constant 0 : index
    %71 = vector.load %arg8[%c0_31, %c0_32] : memref<4x8xf32, #tpu.memory_space<vmem>>, vector<4x8xf32>
    %cst_33 = arith.constant dense<0.000000e+00> : vector<4x1xf32>
    %72 = tpu.matmul %71, %70, %cst_33 {dimension_numbers = #tpu.dot_dimension_numbers<[1], [0], [0], [1], [0, 0, 1, 1], [], []>} : vector<4x8xf32>, vector<8x1xf32>, vector<4x1xf32> -> vector<4x1xf32>
    %c0_34 = arith.constant 0 : index
    %c0_35 = arith.constant 0 : index
    %73 = vector.load %arg9[%c0_34, %c0_35] : memref<4x1xf32, #tpu.memory_space<vmem>>, vector<4x1xf32>
    %74 = arith.addf %72, %73 : vector<4x1xf32>
    %cst_36 = arith.constant 0.000000e+00 : f32
    %75 = vector.broadcast %cst_36 : f32 to vector<4x1xf32>
    %76 = arith.maximumf %74, %75 : vector<4x1xf32>
    %c0_37 = arith.constant 0 : index
    %c0_38 = arith.constant 0 : index
    %77 = vector.load %arg10[%c0_37, %c0_38] : memref<8x4xf32, #tpu.memory_space<vmem>>, vector<8x4xf32>
    %cst_39 = arith.constant dense<0.000000e+00> : vector<8x1xf32>
    %78 = tpu.matmul %77, %76, %cst_39 {dimension_numbers = #tpu.dot_dimension_numbers<[1], [0], [0], [1], [0, 0, 1, 1], [], []>} : vector<8x4xf32>, vector<4x1xf32>, vector<8x1xf32> -> vector<8x1xf32>
    %c0_40 = arith.constant 0 : index
    %c0_41 = arith.constant 0 : index
    %79 = vector.load %arg11[%c0_40, %c0_41] : memref<8x1xf32, #tpu.memory_space<vmem>>, vector<8x1xf32>
    %80 = arith.addf %78, %79 : vector<8x1xf32>
    %81 = arith.negf %80 : vector<8x1xf32>
    %82 = math.exp %81 : vector<8x1xf32>
    %cst_42 = arith.constant 1.000000e+00 : f32
    %83 = vector.broadcast %cst_42 : f32 to vector<8x1xf32>
    %84 = arith.addf %83, %82 : vector<8x1xf32>
    %85 = arith.divf %83, %84 : vector<8x1xf32>
    %86 = vector.broadcast %85 : vector<8x1xf32> to vector<8x256xf32>
    %87 = arith.mulf %66, %86 : vector<8x256xf32>
    %88 = vector.shape_cast %87 : vector<8x256xf32> to vector<1x8x256xf32>
    %c0_43 = arith.constant 0 : index
    %c0_44 = arith.constant 0 : index
    %c0_45 = arith.constant 0 : index
    %89 = vector.load %arg12[%c0_43, %c0_44, %c0_45] : memref<1x8x256xf32, #tpu.memory_space<vmem>>, vector<1x8x256xf32>
    tpu.vector_store %arg12[%c0_43, %c0_44, %c0_45], %88 {strides = array<i32>} : memref<1x8x256xf32, #tpu.memory_space<vmem>>, vector<1x8x256xf32>,
    return
  }
  func.func @transform_0(%arg0: i32) -> (i32, i32, i32) {
    %c0_i32 = arith.constant 0 : i32
    %c0_i32_0 = arith.constant 0 : i32
    %c0_i32_1 = arith.constant 0 : i32
    return %arg0, %c0_i32, %c0_i32_0 : i32, i32, i32
  }
  func.func @transform_1(%arg0: i32) -> (i32, i32) {
    %c0_i32 = arith.constant 0 : i32
    %c0_i32_0 = arith.constant 0 : i32
    %c0_i32_1 = arith.constant 0 : i32
    return %c0_i32, %c0_i32_0 : i32, i32
  }
  func.func @transform_2(%arg0: i32) -> (i32, i32) {
    %c0_i32 = arith.constant 0 : i32
    %c0_i32_0 = arith.constant 0 : i32
    %c0_i32_1 = arith.constant 0 : i32
    return %c0_i32, %c0_i32_0 : i32, i32
  }
  func.func @transform_3(%arg0: i32) -> (i32, i32) {
    %c0_i32 = arith.constant 0 : i32
    %c0_i32_0 = arith.constant 0 : i32
    %c0_i32_1 = arith.constant 0 : i32
    return %c0_i32, %c0_i32_0 : i32, i32
  }
  func.func @transform_4(%arg0: i32) -> (i32, i32) {
    %c0_i32 = arith.constant 0 : i32
    %c0_i32_0 = arith.constant 0 : i32
    %c0_i32_1 = arith.constant 0 : i32
    return %c0_i32, %c0_i32_0 : i32, i32
  }
  func.func @transform_5(%arg0: i32) -> (i32, i32) {
    %c0_i32 = arith.constant 0 : i32
    %c0_i32_0 = arith.constant 0 : i32
    %c0_i32_1 = arith.constant 0 : i32
    return %c0_i32, %c0_i32_0 : i32, i32
  }
  func.func @transform_6(%arg0: i32) -> (i32, i32) {
    %c0_i32 = arith.constant 0 : i32
    %c0_i32_0 = arith.constant 0 : i32
    %c0_i32_1 = arith.constant 0 : i32
    return %c0_i32, %c0_i32_0 : i32, i32
  }
  func.func @transform_7(%arg0: i32) -> (i32, i32) {
    %c0_i32 = arith.constant 0 : i32
    %c0_i32_0 = arith.constant 0 : i32
    %c0_i32_1 = arith.constant 0 : i32
    return %c0_i32, %c0_i32_0 : i32, i32
  }
  func.func @transform_8(%arg0: i32) -> (i32, i32) {
    %c0_i32 = arith.constant 0 : i32
    %c0_i32_0 = arith.constant 0 : i32
    %c0_i32_1 = arith.constant 0 : i32
    return %c0_i32, %c0_i32_0 : i32, i32
  }
  func.func @transform_9(%arg0: i32) -> (i32, i32) {
    %c0_i32 = arith.constant 0 : i32
    %c0_i32_0 = arith.constant 0 : i32
    %c0_i32_1 = arith.constant 0 : i32
    return %c0_i32, %c0_i32_0 : i32, i32
  }
  func.func @transform_10(%arg0: i32) -> (i32, i32) {
    %c0_i32 = arith.constant 0 : i32
    %c0_i32_0 = arith.constant 0 : i32
    %c0_i32_1 = arith.constant 0 : i32
    return %c0_i32, %c0_i32_0 : i32, i32
  }
  func.func @transform_11(%arg0: i32) -> (i32, i32, i32) {
    %c0_i32 = arith.constant 0 : i32
    %c0_i32_0 = arith.constant 0 : i32
    %c0_i32_1 = arith.constant 0 : i32
    return %arg0, %c0_i32, %c0_i32_0 : i32, i32, i32
  }
}

</mosaic_0001>

<bundles_post_ra>
// kernel: conv_se_attention_block.1
= control target key start
LH: loop header
LB: loop body
LE: loop exit
PB: predicated region body
PF: predicated region fallthrough
CT: control target
= control target key end

     0   :  { %s2087_s17 = smov 0   ;;  %s2920_s0 = inlined_call_operand.vmem [shape: f32[2,4,256], index: 0, kind: input, shape index: {}]   ;;  %s2921_s1 = inlined_call_operand.vmem [shape: f32[9,256], index: 1, kind: input, shape index: {}]   ;;  %s2922_s2 = inlined_call_operand.vmem [shape: bf16[8,36], index: 2, kind: input, shape index: {}]   ;;  %s2923_s3 = inlined_call_operand.vmem [shape: f32[8,1], index: 3, kind: input, shape index: {}]   ;;  %s2924_s4 = inlined_call_operand.vmem [shape: bf16[8,8], index: 4, kind: input, shape index: {}]   ;;  %s2925_s5 = inlined_call_operand.vmem [shape: bf16[8,8], index: 5, kind: input, shape index: {}]   ;;  %s2926_s6 = inlined_call_operand.vmem [shape: bf16[8,8], index: 6, kind: input, shape index: {}]   ;;  %s2927_s7 = inlined_call_operand.vmem [shape: f32[4,8], index: 7, kind: input, shape index: {}]   ;;  %s2928_s8 = inlined_call_operand.vmem [shape: f32[4,1], index: 8, kind: input, shape index: {}]   ;;  %s2929_s9 = inlined_call_operand.vmem [shape: f32[8,4], index: 9, kind: input, shape index: {}]   ;;  %s2930_s10 = inlined_call_operand.vmem [shape: f32[8,1], index: 10, kind: input, shape index: {}]   ;;  %s2931_s11 = inlined_call_operand.vmem [shape: f32[2,8,256], index: 11, kind: output, shape index: {}]  }
   0x1 LB: > { %s1725_s18 = sadd.s32 4294967295, %s2015_s17   ;;  %p1729_p0 = scmp.ge.s32.totalorder %s2015_s17, 1  ;;  %s2015_s17 = sphi %s2087_s17, %s21_s17  }
   0x2   : > { %p337_p1 = scmp.lt.s32.totalorder %s2015_s17, 3 }
   0x4   : > { %p338_p2 = pnand %p1729_p0, %p337_p1 }
   0x6   : > { %341 = sbr.rel (%p338_p2) target bundleno = 2078 (0x81e), region = 64 }
   0xb   : > { %p377_p3 = scmp.lt.s32.totalorder %s1725_s18, 1  ;;  %s2017_s23 = smov 17   ;;  %v399_v24 = vlaneseq  ;;  %v604_v28 = vld [vmem:[%s2923_s3] sm:$0xff]  ;;  %v2025_v29 = vmov 0   ;;  %vm588_vm7 = vcmask 1043456   ;;  %vm614_vm8 = vcmask 1041408  }
   0xc   : > { %s2018_s24 = smov 16   ;;  %s2019_s25 = smov 1   ;;  %1809 = vset.pattern.permute.xlu1 %v2025_v29  ;;  %1810 = vset.pattern.permute.xlu0 %v2025_v29  ;;  %v2115_v30 = vld [vmem:[%s2921_s1 + $0x3] ss:$8 sm:$0x3]  ;;  %vm610_vm10 = vcmask 293888  }
   0xd   : > { %s3047_s18 = smov (!%p377_p3, %s1725_s18), 1  ;;  %s2020_s26 = smov 127   ;;  %v2107_v27 = vand.u32 127, %v399_v24  ;;  %v1734_v31 = vld [vmem:[%s2921_s1 + $0x1] ss:$8 sm:$0x3] }
   0xe   : > { %s1787_s19 = sshll.u32 %s3047_s18, 3  ;;  %s2021_s27 = smov 113   ;;  %v1739_v32 = vld [vmem:[%s2921_s1 + $0x7] ss:$8 sm:$0x3]  ;;  %v469_v35 = vperm.slane %v2115_v30, 0 }
   0xf   : > { %s381_s22 = scalar_lea.vmem %s2920_s0, %s1787_s19  ;;  %s2022_s28 = smov 112   ;;  %vm421_vm0 = vcmp.lt.s32.totalorder %v2107_v27, 16  ;;  %v1737_v33 = vld [vmem:[%s2921_s1 + $0x5] ss:$8 sm:$0x3]  ;;  %vm526_vm1 = vcmp.lt.s32.totalorder %v2107_v27, 112 }
  0x10   : > { %v388_v0 = vld [vmem:[%s381_s22] sm:$0xff]  ;;  %s2023_s29 = smov 111   ;;  %s2024_s30 = smov 15   ;;  %v427_v36 = vperm.slane %v1734_v31, 0  ;;  %v428_v37 = vperm.slane %v1734_v31, 1  ;;  %vm484_vm2 = vcmp.lt.s32.totalorder %v2107_v27, 127 }
  0x11   : > { %390 = vst [vmem:[#allocation1] ss:$2 sm:$0xff] %v388_v0  ;;  %v532_v40 = vperm.slane %v1739_v32, 0  ;;  %v533_v41 = vperm.slane %v1739_v32, 1  ;;  %v490_v44 = vperm.slane %v1737_v33, 0  ;;  %v491_v45 = vperm.slane %v1737_v33, 1 }
  0x12   : > { %v1738_v48 = vld [vmem:[%s2921_s1 + $0x6] ss:$8 sm:$0x3]  ;;  %vm463_vm3 = vcmp.lt.s32.totalorder %v2107_v27, 1  ;;  %v470_v49 = vperm.slane %v2115_v30, 1  ;;  %vm505_vm4 = vcmp.lt.s32.totalorder %v2107_v27, 113 }
  0x13   : > { %v404_v54 = vld [vmem:[%s2921_s1] ss:$8 sm:$0x3]  ;;  %v1740_v55 = vld [vmem:[%s2921_s1 + $0x10] ss:$8 sm:$0x3] }
  0x14   : > { %v511_v58 = vperm.slane %v1738_v48, 0  ;;  %v512_v61 = vperm.slane %v1738_v48, 1  ;;  %vm401_vm5 = vcmp.lt.s32.totalorder %v2107_v27, 17  ;;  %v406_v62 = vperm.slane %v404_v54, 0  ;;  %s1788_s12 = sshll.u32 %s3047_s18, 4 }
  0x15   : > { %vm547_vm6 = vcmp.lt.s32.totalorder %v2107_v27, 111  ;;  %v553_v63 = vperm.slane %v1740_v55, 0  ;;  %vm442_vm9 = vcmp.lt.s32.totalorder %v2107_v27, 15  ;;  %v597_v27 = vld [vmem:[%s2922_s2] sm:$0xf]  ;;  %vm652_vm11 = vcmask 64512   ;;  %s386_s15 = scalar_lea.vmem %s2931_s11, %s1788_s12 }
  0x16   : > { %vm1615_vm13 = vcmask 31744  }
  0x18   : > { %v391_v1 = vld.sshfl [vmem:[#allocation1] sm:$0xff pattern:$0x75316420]  ;;  %v392_v2 = vld.sshfl [vmem:[#allocation1 + $0x8] sm:$0xff pattern:$0x75316420] }
  0x19   : > { %412 = vst [vmem:[#allocation1] ss:$2 sm:$0xff] %v388_v0  ;;  %395 = vrot.lane.b32.xlu0 %v391_v1, %s2017_s23 }
  0x20   : > { %v413_v3 = vld.sshfl [vmem:[#allocation1] sm:$0xff pattern:$0x75316420]  ;;  %v414_v4 = vld.sshfl [vmem:[#allocation1 + $0x8] sm:$0xff pattern:$0x75316420] }
  0x21   : > { %433 = vst [vmem:[#allocation1] ss:$2 sm:$0xff] %v388_v0  ;;  %419 = vrot.lane.b32.xlu0 %v414_v4, %s2018_s24  ;;  %417 = vrot.lane.b32.xlu2 %v413_v3, %s2018_s24  ;;  %v407_v3 = vperm.slane %v404_v54, 1 }
  0x28   : > { %v434_v5 = vld.sshfl [vmem:[#allocation1] sm:$0xff pattern:$0x75316420]  ;;  %v435_v6 = vld.sshfl [vmem:[#allocation1 + $0x8] sm:$0xff pattern:$0x75316420] }
  0x29   : > { %454 = vst [vmem:[#allocation1] ss:$2 sm:$0xff] %v388_v0 }
  0x30   : > { %v455_v7 = vld.sshfl [vmem:[#allocation1] sm:$0xff pattern:$0x75316420]  ;;  %v456_v8 = vld.sshfl [vmem:[#allocation1 + $0x8] sm:$0xff pattern:$0x75316420] }
  0x31   : > { %459 = vrot.lane.b32.xlu1 %v455_v7, %s2019_s25  ;;  %475 = vst [vmem:[#allocation1] ss:$2 sm:$0xff] %v388_v0  ;;  %461 = vrot.lane.b32.xlu2 %v456_v8, %s2019_s25 }
  0x38   : > { %v476_v9 = vld.sshfl [vmem:[#allocation1] sm:$0xff pattern:$0x75316420]  ;;  %v477_v10 = vld.sshfl [vmem:[#allocation1 + $0x8] sm:$0xff pattern:$0x75316420] }
  0x39   : > { %480 = vrot.lane.b32.xlu1 %v476_v9, %s2020_s26  ;;  %496 = vst [vmem:[#allocation1] ss:$2 sm:$0xff] %v388_v0 }
  0x40   : > { %v498_v11 = vld.sshfl [vmem:[#allocation1 + $0x8] sm:$0xff pattern:$0x75316420]  ;;  %v497_v12 = vld.sshfl [vmem:[#allocation1] sm:$0xff pattern:$0x75316420] }
  0x41   : > { %482 = vrot.lane.b32.xlu1 %v477_v10, %s2020_s26  ;;  %501 = vrot.lane.b32.xlu0 %v497_v12, %s2021_s27  ;;  %517 = vst [vmem:[#allocation1] ss:$2 sm:$0xff] %v388_v0 }
  0x48   : > { %v518_v13 = vld.sshfl [vmem:[#allocation1] sm:$0xff pattern:$0x75316420]  ;;  %v519_v14 = vld.sshfl [vmem:[#allocation1 + $0x8] sm:$0xff pattern:$0x75316420] }
  0x49   : > { %503 = vrot.lane.b32.xlu1 %v498_v11, %s2021_s27  ;;  %538 = vst [vmem:[#allocation1] ss:$2 sm:$0xff] %v388_v0  ;;  %522 = vrot.lane.b32.xlu2 %v518_v13, %s2022_s28  ;;  %v1735_v13 = vld [vmem:[%s2921_s1 + $0x2] ss:$8 sm:$0x3] }
  0x50   : > { %v539_v15 = vld.sshfl [vmem:[#allocation1] sm:$0xff pattern:$0x75316420]  ;;  %v540_v16 = vld.sshfl [vmem:[#allocation1 + $0x8] sm:$0xff pattern:$0x75316420] }
  0x51   : > { %397 = vrot.lane.b32.xlu1 %v392_v2, %s2017_s23  ;;  %543 = vrot.lane.b32.xlu0 %v539_v15, %s2023_s29  ;;  %571 = vst [vmem:[#allocation1] ss:$2 sm:$0xff] %v388_v0  ;;  %v554_v0 = vperm.slane %v1740_v55, 1 }
  0x52   : > { %524 = vrot.lane.b32.xlu2 %v519_v14, %s2022_s28 }
  0x59   : > { %545 = vrot.lane.b32.xlu0 %v540_v16, %s2023_s29  ;;  %607 = vperm.xlu1 %1809, %v604_v28   ;;  %v449_v28 = vperm.slane %v1735_v13, 1 }
  0x5a   : > { %438 = vrot.lane.b32.xlu2 %v434_v5, %s2024_s30 }
  0x61   : > { %440 = vrot.lane.b32.xlu0 %v435_v6, %s2024_s30 }
  0x7b   : > { %v418_v17 = vpop.permute.xlu2 %417 }
  0x8b   : > { %v2105_v19 = vpop.permute.xlu0 %395  ;;  %v462_v20 = vpop.permute.xlu2 %461 }
  0x93   : > { %v420_v22 = vpop.permute.xlu0 %419 }
  0x94   : > { %v422_v38 = vsel %vm421_vm0, %v418_v17, %v420_v22  ;;  %v423_v39 = vsel %vm421_vm0, %v420_v22, %v418_v17  ;;  %v572_v22 = vld.sshfl [vmem:[#allocation1] sm:$0xff pattern:$0x75316420] }
  0x95   : > { %v2135_v52 = vmul.f32 %v427_v36, %v423_v39  ;;  %v2137_v53 = vmul.f32 %v428_v37, %v422_v38 }
  0x97   : > { %v561_v38 = vrot.slane %v2135_v52, 4  ;;  %v562_v39 = vrot.slane %v2137_v53, 4 }
  0xa3   : > { %v2103_v18 = vpop.permute.xlu1 %459  ;;  %v523_v23 = vpop.permute.xlu2 %522 }
  0xa4   : > { %v464_v4 = vsel %vm463_vm3, %v2103_v18, %v462_v20  ;;  %v465_v5 = vsel %vm463_vm3, %v462_v20, %v2103_v18 }
  0xa5   : > { %v473_v24 = vmul.f32 %v469_v35, %v465_v5  ;;  %v474_v18 = vmul.f32 %v470_v49, %v464_v4  ;;  %v651_v5 = vld [vmem:[%s2924_s4] sm:$0xf] }
  0xab   : > { %v481_v21 = vpop.permute.xlu1 %480 }
  0xac   : > { %v525_v34 = vpop.permute.xlu2 %524 }
  0xad   : > { %v527_v46 = vsel %vm526_vm1, %v523_v23, %v525_v34  ;;  %v528_v47 = vsel %vm526_vm1, %v525_v34, %v523_v23  ;;  %v573_v23 = vld.sshfl [vmem:[#allocation1 + $0x8] sm:$0xff pattern:$0x75316420] }
  0xae   : > { %v536_v56 = vmul.f32 %v532_v40, %v527_v46  ;;  %v537_v57 = vmul.f32 %v533_v41, %v528_v47  ;;  %v567_v46 = vrot.slane %v473_v24, 4  ;;  %v568_v47 = vrot.slane %v474_v18, 4 }
  0xb0   : > { %v584_v6 = vrot.slane %v536_v56, 4  ;;  %v585_v7 = vrot.slane %v537_v57, 4 }
  0xb3   : > { %v483_v25 = vpop.permute.xlu1 %482  ;;  %v502_v26 = vpop.permute.xlu0 %501 }
  0xb4   : > { %v485_v50 = vsel %vm484_vm2, %v481_v21, %v483_v25  ;;  %v486_v51 = vsel %vm484_vm2, %v483_v25, %v481_v21  ;;  %v439_v35 = vpop.permute.xlu2 %438 }
  0xb5   : > { %v494_v59 = vmul.f32 %v490_v44, %v485_v50  ;;  %v495_v60 = vmul.f32 %v491_v45, %v486_v51 }
  0xb7   : > { %v578_v9 = vrot.slane %v494_v59, 4  ;;  %v579_v10 = vrot.slane %v495_v60, 4 }
  0xb9   : > { %v593_v31 = vsel %vm588_vm7, %v572_v22, %v578_v9  ;;  %v594_v32 = vsel %vm588_vm7, %v573_v23, %v579_v10 }
  0xbb   : > { %v504_v42 = vpop.permute.xlu1 %503 }
  0xbc   : > { %v506_v1 = vsel %vm505_vm4, %v502_v26, %v504_v42  ;;  %v507_v2 = vsel %vm505_vm4, %v504_v42, %v502_v26  ;;  %v448_v26 = vperm.slane %v1735_v13, 0 }
  0xbd   : > { %v515_v14 = vmul.f32 %v511_v58, %v506_v1  ;;  %v516_v15 = vmul.f32 %v512_v61, %v507_v2 }
  0xbf   : > { %v595_v36 = vsel %vm588_vm7, %v515_v14, %v584_v6  ;;  %v596_v37 = vsel %vm588_vm7, %v516_v15, %v585_v7  ;;  %v688_v6 = vld [vmem:[%s2925_s5] sm:$0xf] }
  0xc0   : > { %v600_v44 = vpack.c.bf16 %v595_v36, %v593_v31  ;;  %v601_v45 = vpack.c.bf16 %v596_v37, %v594_v32  ;;  %v718_v7 = vld [vmem:[%s2926_s6] sm:$0xf] }
  0xc3   : > { %v544_v43 = vpop.permute.xlu0 %543  ;;  %v398_v16 = vpop.permute.xlu1 %397 }
  0xc4   : > { %v402_v29 = vsel %vm401_vm5, %v2105_v19, %v398_v16  ;;  %v403_v30 = vsel %vm401_vm5, %v398_v16, %v2105_v19 }
  0xc5   : > { %v410_v40 = vmul.f32 %v406_v62, %v403_v30  ;;  %v411_v41 = vmul.f32 %v407_v3, %v402_v29 }
  0xc7   : > { %v589_v50 = vsel %vm588_vm7, %v410_v40, %v561_v38  ;;  %v590_v52 = vsel %vm588_vm7, %v411_v41, %v562_v39 }
  0xcb   : > { %v546_v8 = vpop.permute.xlu0 %545  ;;  %v608_v56 = vpop.permute.xlu1 %607 }
  0xcc   : > { %v548_v11 = vsel %vm547_vm6, %v544_v43, %v546_v8  ;;  %v549_v12 = vsel %vm547_vm6, %v546_v8, %v544_v43 }
  0xcd   : > { %v557_v17 = vmul.f32 %v553_v63, %v548_v11  ;;  %v558_v21 = vmul.f32 %v554_v0, %v549_v12 }
  0xcf   : > { %v602_v20 = vpack.c.bf16 %v557_v17, %v557_v17  ;;  %v603_v25 = vpack.c.bf16 %v558_v21, %v558_v21 }
  0xd1   : > { %v616_v33 = vsel %vm614_vm8, %v602_v20, 0  ;;  %v619_v34 = vsel %vm614_vm8, %v603_v25, 0 }
  0xd2   : > { %626 = vmatpush.bf16.msra.mxu0 %v616_v33  ;;  %639 = vmatpush.bf16.msra.mxu1 %v619_v34 }
  0xd3   : > { %v441_v19 = vpop.permute.xlu0 %440 }
  0xd4   : > { %v443_v42 = vsel %vm442_vm9, %v439_v35, %v441_v19  ;;  %v444_v43 = vsel %vm442_vm9, %v441_v19, %v439_v35 }
  0xd5   : > { %v452_v48 = vmul.f32 %v448_v26, %v444_v43  ;;  %v453_v49 = vmul.f32 %v449_v28, %v443_v42 }
  0xd6   : > { %627 = vmatpush.bf16.msra.mxu0 %v600_v44  ;;  %640 = vmatpush.bf16.msra.mxu1 %v601_v45 }
  0xd7   : > { %v591_v51 = vsel %vm588_vm7, %v452_v48, %v567_v46  ;;  %v592_v53 = vsel %vm588_vm7, %v453_v49, %v568_v47 }
  0xd8   : > { %v598_v54 = vpack.c.bf16 %v591_v51, %v589_v50  ;;  %v599_v55 = vpack.c.bf16 %v592_v53, %v590_v52 }
  0xda   : > { %628 = vmatpush.bf16.msra.mxu0 %v598_v54  ;;  %641 = vmatpush.bf16.msra.mxu1 %v599_v55 }
  0xdd   : > { %1741 = vmatmul.msk.bf16.vlgmr.msra.gmra.mxu0 %vm610_vm10, %v597_v27  ;;  %1742 = vmatmul.msk.bf16.vlgmr.msra.gmra.mxu1 %vm610_vm10, %v597_v27 }
 0x15a   : > { %v630_v57 = vpop.f32.mrf.mxu0  ;;  %v643_v58 = vpop.f32.mrf.mxu1 }
 0x15b   : > { %v631_v59 = vadd.f32 %v630_v57, %v608_v56  ;;  %v644_v60 = vadd.f32 %v643_v58, %v608_v56 }
 0x15d   : > { %v2181_v61 = vmax.f32 %v631_v59, 0.0  ;;  %v2183_v62 = vmax.f32 %v644_v60, 0.0 }
 0x15f   : > { %2968 = vst [vmem:[#allocation2_spill] sm:$0xff] %v2181_v61  ;;  %v649_v63 = vpack.c.bf16 %v2181_v61, %v2181_v61  ;;  %v650_v0 = vpack.c.bf16 %v2183_v62, %v2183_v62 }
 0x160   : > { %2969 = vst [vmem:[#allocation3_spill] sm:$0xff] %v2183_v62 }
 0x161   : > { %v657_v1 = vsel %vm588_vm7, %v649_v63, 0  ;;  %v660_v2 = vsel %vm588_vm7, %v650_v0, 0 }
 0x162   : > { %v632_v3 = vpop.f32.mrf.mxu0  ;;  %v645_v4 = vpop.f32.mrf.mxu1  ;;  %669 = vmatpush.bf16.msrb.mxu0 %v657_v1  ;;  %682 = vmatpush.bf16.msra.mxu3 %v660_v2 }
 0x163   : > { %699 = vmatpush.bf16.msra.mxu2 %v657_v1  ;;  %742 = vmatpush.bf16.msrb.mxu1 %v660_v2 }
 0x165   : > { %1743 = vmatmul.msk.bf16.vlgmr.msrb.gmra.mxu0 %vm652_vm11, %v651_v5  ;;  %1744 = vmatmul.msk.bf16.vlgmr.msra.gmra.mxu3 %vm652_vm11, %v651_v5 }
 0x166   : > { %712 = vmatpush.bf16.msrb.mxu3 %v660_v2  ;;  %729 = vmatpush.bf16.msra.mxu0 %v657_v1 }
 0x167   : > { %1745 = vmatmul.msk.bf16.vlgmr.msra.gmra.mxu2 %vm652_vm11, %v688_v6  ;;  %1748 = vmatmul.msk.bf16.vlgmr.msrb.gmra.mxu1 %vm652_vm11, %v718_v7 }
 0x175   : > { %1746 = vmatmul.msk.bf16.vlgmr.msrb.gmra.mxu3 %vm652_vm11, %v688_v6  ;;  %1747 = vmatmul.msk.bf16.vlgmr.msra.gmra.mxu0 %vm652_vm11, %v718_v7 }
 0x1e2   : > { %v671_v8 = vpop.f32.mrf.mxu0 }
 0x1e3   : > { %v748_v9 = vpack.c.bf16 %v671_v8, %v671_v8 }
 0x1e4   : > { %v2220_v35 = vpop.f32.mrf.mxu1 }
 0x1e5   : > { %2971 = vst [vmem:[#allocation5_spill] sm:$0xff] %v2220_v35 }
 0x1e8   : > { %v684_v10 = vpop.f32.mrf.mxu3 }
 0x1e9   : > { %v749_v11 = vpack.c.bf16 %v684_v10, %v684_v10 }
 0x1ea   : > { %v673_v12 = vpop.f32.mrf.mxu0  ;;  %v701_v14 = vpop.f32.mrf.mxu2 }
 0x1eb   : > { %752 = vxpose.binary.xlu2.c.b16.start.end [1/2] (short) %v749_v11, %v748_v9, 128  ;;  %v750_v16 = vpack.c.bf16 %v701_v14, %v701_v14 }
 0x1ec   : > { %v746_v38 = vpop.f32.mrf.mxu1 }
 0x1ed   : > { %v825_v21 = vsel %vm588_vm7, %v750_v16, 0 }
 0x1ee   : > { %837 = vmatpush.bf16.msrb.mxu0 %v825_v21  ;;  %1789 = vmatpush.bf16.msrb.mxu2 %v825_v21 }
 0x1f0   : > { %v686_v13 = vpop.f32.mrf.mxu3 }
 0x1f2   : > { %v703_v24 = vpop.f32.mrf.mxu2  ;;  %v2218_v34 = vpop.f32.mrf.mxu0 }
 0x1f3   : > { %2970 = vst [vmem:[#allocation4_spill] sm:$0xff] %v2218_v34 }
 0x1f8   : > { %v714_v15 = vpop.f32.mrf.mxu3 }
 0x1f9   : > { %v751_v17 = vpack.c.bf16 %v714_v15, %v714_v15 }
 0x1fa   : > { %v733_v37 = vpop.f32.mrf.mxu0 }
 0x1fb   : > { %v828_v22 = vsel %vm588_vm7, %v751_v17, 0 }
 0x1fc   : > { %926 = vmatpush.bf16.msra.mxu1 %v828_v22  ;;  %1790 = vmatpush.bf16.msra.mxu3 %v828_v22 }
 0x200   : > { %v716_v23 = vpop.f32.mrf.mxu3 }
 0x28c   : > { %v760_v18 = vpop.trf.xlu2 }
 0x28d   : > { %1749 = vmatmul.msk.bf16.vlgmr.msrb.gmra.mxu0 %vm652_vm11, %v760_v18  ;;  %1765 = vmatmul.msk.bf16.vlgmr.msra.gmra.mxu1 %vm652_vm11, %v760_v18 }
 0x294   : > { %v761_v20 = vpop.trf.xlu2 }
 0x29c   : > { %v762_v25 = vpop.trf.xlu2 }
 0x29d   : > { %1750 = vmatmul.msk.bf16.gmra.mxu0 %vm652_vm11, %v762_v25  ;;  %1766 = vmatmul.msk.bf16.gmra.mxu1 %vm652_vm11, %v762_v25 }
 0x2a4   : > { %v763_v26 = vpop.trf.xlu2 }
 0x2ac   : > { %v764_v28 = vpop.trf.xlu2 }
 0x2ad   : > { %1751 = vmatmul.msk.bf16.gmra.mxu0 %vm652_vm11, %v764_v28  ;;  %1767 = vmatmul.msk.bf16.gmra.mxu1 %vm652_vm11, %v764_v28 }
 0x2b4   : > { %v765_v29 = vpop.trf.xlu2 }
 0x2bc   : > { %v766_v30 = vpop.trf.xlu2 }
 0x2bd   : > { %1752 = vmatmul.msk.bf16.gmra.mxu0 %vm652_vm11, %v766_v30  ;;  %1768 = vmatmul.msk.bf16.gmra.mxu1 %vm652_vm11, %v766_v30 }
 0x2c4   : > { %v767_v31 = vpop.trf.xlu2 }
 0x2cc   : > { %v768_v32 = vpop.trf.xlu2 }
 0x2cd   : > { %1753 = vmatmul.msk.bf16.vlgmr.msrb.gmra.mxu2 %vm652_vm11, %v768_v32  ;;  %1769 = vmatmul.msk.bf16.gmra.mxu1 %vm652_vm11, %v768_v32 }
 0x2d4   : > { %v769_v33 = vpop.trf.xlu2 }
 0x2dc   : > { %v770_v36 = vpop.trf.xlu2 }
 0x2dd   : > { %1754 = vmatmul.msk.bf16.gmra.mxu2 %vm652_vm11, %v770_v36  ;;  %1770 = vmatmul.msk.bf16.vlgmr.msra.gmra.mxu3 %vm652_vm11, %v770_v36 }
 0x2e4   : > { %v771_v39 = vpop.trf.xlu2 }
 0x2ec   : > { %v772_v40 = vpop.trf.xlu2 }
 0x2ed   : > { %1755 = vmatmul.msk.bf16.gmra.mxu2 %vm652_vm11, %v772_v40  ;;  %1771 = vmatmul.msk.bf16.gmra.mxu3 %vm652_vm11, %v772_v40 }
 0x2f4   : > { %v773_v41 = vpop.trf.xlu2 }
 0x2fc   : > { %v774_v19 = vpop.trf.xlu2 }
 0x2fd   : > { %1756 = vmatmul.msk.bf16.gmra.mxu2 %vm652_vm11, %v774_v19  ;;  %1772 = vmatmul.msk.bf16.gmra.mxu3 %vm652_vm11, %v774_v19 }
 0x304   : > { %v775_v15 = vpop.trf.xlu2 }
 0x30a   : > { %v2230_v42 = vpop.f32.mrf.mxu1  ;;  %v2240_v45 = vpop.f32.mrf.mxu0 }
 0x30b   : > { %2972 = vst [vmem:[#allocation6_spill] sm:$0xff] %v2230_v42 }
 0x30d   : > { %1757 = vmatmul.msk.bf16.gmra.mxu2 %vm652_vm11, %v761_v20  ;;  %1773 = vmatmul.msk.bf16.gmra.mxu3 %vm652_vm11, %v761_v20  ;;  %v1008_v20 = vmax.f32 %v2240_v45, %v2230_v42 }
 0x312   : > { %v2234_v43 = vpop.f32.mrf.mxu1  ;;  %v2244_v47 = vpop.f32.mrf.mxu0 }
 0x31a   : > { %v2236_v44 = vpop.f32.mrf.mxu1  ;;  %v2250_v49 = vpop.f32.mrf.mxu0 }
 0x31b   : > { %v1014_v22 = vmax.f32 %v2250_v49, %v2236_v44 }
 0x31d   : > { %1758 = vmatmul.msk.bf16.gmra.mxu2 %vm652_vm11, %v763_v26  ;;  %1774 = vmatmul.msk.bf16.gmra.mxu3 %vm652_vm11, %v763_v26 }
 0x322   : > { %v2242_v46 = vpop.f32.mrf.mxu1  ;;  %v2256_v51 = vpop.f32.mrf.mxu0 }
 0x323   : > { %2973 = vst [vmem:[#allocation7_spill] sm:$0xff] %v2242_v46  ;;  %v1017_v18 = vmax.f32 %v2256_v51, %v2242_v46 }
 0x324   : > { %2975 = vst [vmem:[#allocation9_spill] sm:$0xff] %v2256_v51 }
 0x32a   : > { %v2246_v48 = vpop.f32.mrf.mxu1  ;;  %v2262_v54 = vpop.f32.mrf.mxu0 }
 0x32b   : > { %v1020_v14 = vmax.f32 %v2262_v54, %v2246_v48 }
 0x32d   : > { %1759 = vmatmul.msk.bf16.gmra.mxu2 %vm652_vm11, %v765_v29  ;;  %1775 = vmatmul.msk.bf16.gmra.mxu3 %vm652_vm11, %v765_v29  ;;  %v1011_v29 = vmax.f32 %v2244_v47, %v2234_v43 }
 0x332   : > { %v2252_v50 = vpop.f32.mrf.mxu1  ;;  %v2276_v59 = vpop.f32.mrf.mxu0 }
 0x333   : > { %2974 = vst [vmem:[#allocation8_spill] sm:$0xff] %v2252_v50  ;;  %v1023_v21 = vmax.f32 %v2276_v59, %v2252_v50 }
 0x334   : > { %2976 = vst [vmem:[#allocation10_spill] sm:$0xff] %v2276_v59 }
 0x33a   : > { %v2260_v53 = vpop.f32.mrf.mxu1  ;;  %v2288_v3 = vpop.f32.mrf.mxu0 }
 0x33b   : > { %v1026_v9 = vmax.f32 %v2288_v3, %v2260_v53 }
 0x33d   : > { %1760 = vmatmul.msk.bf16.gmra.mxu2 %vm652_vm11, %v767_v31  ;;  %1776 = vmatmul.msk.bf16.gmra.mxu3 %vm652_vm11, %v767_v31 }
 0x342   : > { %v2266_v27 = vpop.f32.mrf.mxu1  ;;  %v2304_v10 = vpop.f32.mrf.mxu0 }
 0x343   : > { %v1029_v13 = vmax.f32 %v2304_v10, %v2266_v27 }
 0x34a   : > { %v2278_v60 = vpop.f32.mrf.mxu1 }
 0x34d   : > { %1761 = vmatmul.msk.bf16.gmra.mxu2 %vm652_vm11, %v769_v33  ;;  %1777 = vmatmul.msk.bf16.gmra.mxu3 %vm652_vm11, %v769_v33 }
 0x350   : > { %v2258_v52 = vpop.f32.mrf.mxu2 }
 0x351   : > { %v1032_v1 = vmax.f32 %v2258_v52, %v2278_v60 }
 0x352   : > { %v2292_v4 = vpop.f32.mrf.mxu1 }
 0x358   : > { %v2264_v55 = vpop.f32.mrf.mxu2 }
 0x359   : > { %v1035_v7 = vmax.f32 %v2264_v55, %v2292_v4 }
 0x35d   : > { %1762 = vmatmul.msk.bf16.gmra.mxu2 %vm652_vm11, %v771_v39  ;;  %1778 = vmatmul.msk.bf16.gmra.mxu3 %vm652_vm11, %v771_v39 }
 0x360   : > { %v2270_v56 = vpop.f32.mrf.mxu2  ;;  %v2272_v57 = vpop.f32.mrf.mxu3 }
 0x361   : > { %v1038_v58 = vmax.f32 %v2270_v56, %v2272_v57 }
 0x363   : > { %1039 = vmax.xlane.f32.xlu1 %v1038_v58 }
 0x368   : > { %v2280_v63 = vpop.f32.mrf.mxu2  ;;  %v2282_v0 = vpop.f32.mrf.mxu3 }
 0x369   : > { %v1041_v2 = vmax.f32 %v2280_v63, %v2282_v0 }
 0x36b   : > { %1033 = vmax.xlane.f32.xlu1 %v1032_v1  ;;  %1042 = vmax.xlane.f32.xlu0 %v1041_v2 }
 0x36d   : > { %1763 = vmatmul.msk.bf16.gmra.mxu2 %vm652_vm11, %v773_v41  ;;  %1779 = vmatmul.msk.bf16.gmra.mxu3 %vm652_vm11, %v773_v41 }
 0x370   : > { %v2294_v5 = vpop.f32.mrf.mxu2  ;;  %v2296_v6 = vpop.f32.mrf.mxu3 }
 0x371   : > { %v1044_v8 = vmax.f32 %v2294_v5, %v2296_v6 }
 0x373   : > { %1036 = vmax.xlane.f32.xlu0 %v1035_v7  ;;  %1045 = vmax.xlane.f32.xlu2 %v1044_v8 }
 0x374   : > { %1027 = vmax.xlane.f32.xlu1 %v1026_v9 }
 0x378   : > { %v2306_v11 = vpop.f32.mrf.mxu2  ;;  %v2308_v12 = vpop.f32.mrf.mxu3 }
 0x379   : > { %v1047_v32 = vmax.f32 %v2306_v11, %v2308_v12 }
 0x37b   : > { %1030 = vmax.xlane.f32.xlu0 %v1029_v13 }
 0x37c   : > { %1021 = vmax.xlane.f32.xlu1 %v1020_v14 }
 0x37d   : > { %1764 = vmatmul.msk.bf16.gmra.mxu2 %vm652_vm11, %v775_v15  ;;  %1780 = vmatmul.msk.bf16.gmra.mxu3 %vm652_vm11, %v775_v15 }
 0x380   : > { %v2316_v16 = vpop.f32.mrf.mxu2  ;;  %v2318_v17 = vpop.f32.mrf.mxu3 }
 0x381   : > { %v1050_v39 = vmax.f32 %v2316_v16, %v2318_v17 }
 0x383   : > { %1024 = vmax.xlane.f32.xlu0 %v1023_v21 }
 0x384   : > { %1015 = vmax.xlane.f32.xlu1 %v1014_v22 }
 0x388   : > { %v2324_v23 = vpop.f32.mrf.mxu2  ;;  %v2326_v24 = vpop.f32.mrf.mxu3 }
 0x389   : > { %v1053_v28 = vmax.f32 %v2324_v23, %v2326_v24 }
 0x38b   : > { %1018 = vmax.xlane.f32.xlu0 %v1017_v18 }
 0x38c   : > { %1009 = vmax.xlane.f32.xlu1 %v1008_v20 }
 0x390   : > { %v2332_v25 = vpop.f32.mrf.mxu2  ;;  %v2334_v26 = vpop.f32.mrf.mxu3 }
 0x391   : > { %2977 = vst [vmem:[#allocation11_spill] sm:$0xff] %v2332_v25  ;;  %v1056_v33 = vmax.f32 %v2332_v25, %v2334_v26 }
 0x392   : > { %2978 = vst [vmem:[#allocation12_spill] sm:$0xff] %v2334_v26 }
 0x393   : > { %1012 = vmax.xlane.f32.xlu0 %v1011_v29 }
 0x394   : > { %1054 = vmax.xlane.f32.xlu1 %v1053_v28 }
 0x398   : > { %v2340_v30 = vpop.f32.mrf.mxu2  ;;  %v2342_v31 = vpop.f32.mrf.mxu3 }
 0x39b   : > { %1048 = vmax.xlane.f32.xlu0 %v1047_v32 }
 0x39c   : > { %1057 = vmax.xlane.f32.xlu1 %v1056_v33 }
 0x3a0   : > { %v2348_v36 = vpop.f32.mrf.mxu2  ;;  %v2350_v37 = vpop.f32.mrf.mxu3 }
 0x3a1   : > { %v1062_v38 = vmax.f32 %v2348_v36, %v2350_v37 }
 0x3a3   : > { %1051 = vmax.xlane.f32.xlu0 %v1050_v39 }
 0x3a4   : > { %1063 = vmax.xlane.f32.xlu1 %v1062_v38 }
 0x3a8   : > { %v2356_v40 = vpop.f32.mrf.mxu2  ;;  %v2358_v41 = vpop.f32.mrf.mxu3 }
 0x3a9   : > { %2979 = vst [vmem:[#allocation13_spill] sm:$0xff] %v2356_v40  ;;  %v1065_v19 = vmax.f32 %v2356_v40, %v2358_v41 }
 0x3aa   : > { %2980 = vst [vmem:[#allocation14_spill] sm:$0xff] %v2358_v41 }
 0x3ab   : > { %1066 = vmax.xlane.f32.xlu0 %v1065_v19 }
 0x3b0   : > { %v2362_v58 = vpop.f32.mrf.mxu2  ;;  %v2364_v1 = vpop.f32.mrf.mxu3 }
 0x3b1   : > { %2981 = vst [vmem:[#allocation15_spill] sm:$0xff] %v2362_v58  ;;  %v1068_v2 = vmax.f32 %v2362_v58, %v2364_v1 }
 0x3b2   : > { %2982 = vst [vmem:[#allocation16_spill] sm:$0xff] %v2364_v1 }
 0x3b3   : > { %1069 = vmax.xlane.f32.xlu1 %v1068_v2 }
 0x3b8   : > { %v2368_v7 = vpop.f32.mrf.mxu2  ;;  %v2370_v8 = vpop.f32.mrf.mxu3 }
 0x3b9   : > { %2983 = vst [vmem:[#allocation17_spill] sm:$0xff] %v2368_v7  ;;  %v1071_v9 = vmax.f32 %v2368_v7, %v2370_v8 }
 0x3ba   : > { %2984 = vst [vmem:[#allocation18_spill] sm:$0xff] %v2370_v8 }
 0x3bb   : > { %1072 = vmax.xlane.f32.xlu0 %v1071_v9 }
 0x3c0   : > { %v2374_v13 = vpop.f32.mrf.mxu2  ;;  %v2376_v14 = vpop.f32.mrf.mxu3 }
 0x3c1   : > { %v1074_v15 = vmax.f32 %v2374_v13, %v2376_v14 }
 0x3c3   : > { %1075 = vmax.xlane.f32.xlu1 %v1074_v15 }
 0x3c8   : > { %v2380_v21 = vpop.f32.mrf.mxu2  ;;  %v2382_v22 = vpop.f32.mrf.mxu3 }
 0x3c9   : > { %2985 = vst [vmem:[#allocation19_spill] sm:$0xff] %v2380_v21  ;;  %v1077_v18 = vmax.f32 %v2380_v21, %v2382_v22 }
 0x3ca   : > { %2986 = vst [vmem:[#allocation20_spill] sm:$0xff] %v2382_v22 }
 0x3cb   : > { %1078 = vmax.xlane.f32.xlu0 %v1077_v18 }
 0x3d0   : > { %v2386_v20 = vpop.f32.mrf.mxu2  ;;  %v2388_v28 = vpop.f32.mrf.mxu3 }
 0x3d1   : > { %v1080_v29 = vmax.f32 %v2386_v20, %v2388_v28 }
 0x3d3   : > { %1081 = vmax.xlane.f32.xlu1 %v1080_v29 }
 0x3d6   : > { %v1040_v32 = vpop.xlane.xlu1 %1039 }
 0x3d7   : > { %v1124_v33 = vsub.f32 %v2270_v56, %v1040_v32  ;;  %v1125_v38 = vsub.f32 %v2272_v57, %v1040_v32 }
 0x3d8   : > { %v2394_v39 = vpop.f32.mrf.mxu2  ;;  %v2396_v19 = vpop.f32.mrf.mxu3 }
 0x3d9   : > { %2987 = vst [vmem:[#allocation21_spill] sm:$0xff] %v2394_v39  ;;  %v1083_v2 = vmax.f32 %v2394_v39, %v2396_v19  ;;  %v1208_v9 = vmul.f32 1.442695, %v1124_v33  ;;  %v1210_v15 = vmul.f32 1.442695, %v1125_v38 }
 0x3da   : > { %2988 = vst [vmem:[#allocation22_spill] sm:$0xff] %v2396_v19 }
 0x3db   : > { %1084 = vmax.xlane.f32.xlu0 %v1083_v2  ;;  %1811 = vpow2.f32 %v1208_v9 }
 0x3dc   : > { %1813 = vpow2.f32 %v1210_v15 }
 0x3de   : > { %v2400_v18 = vpop.xlane.xlu1 %1033  ;;  %v1043_v62 = vpop.xlane.xlu0 %1042 }
 0x3df   : > { %v1126_v29 = vsub.f32 %v2280_v63, %v1043_v62  ;;  %v1127_v56 = vsub.f32 %v2282_v0, %v1043_v62 }
 0x3e0   : > { %v2404_v57 = vpop.f32.mrf.mxu2  ;;  %v2406_v32 = vpop.f32.mrf.mxu3 }
 0x3e1   : > { %v1086_v61 = vmax.f32 %v2404_v57, %v2406_v32  ;;  %v1212_v35 = vmul.f32 1.442695, %v1126_v29  ;;  %v1214_v33 = vmul.f32 1.442695, %v1127_v56  ;;  %v2410_v38 = vpop.eup %1811 }
 0x3e2   : > { %v2412_v2 = vpop.eup %1813 }
 0x3e3   : > { %1087 = vmax.xlane.f32.xlu1 %v1086_v61  ;;  %1815 = vpow2.f32 %v1212_v35  ;;  %v1326_v61 = vadd.f32 %v2412_v2, %v2410_v38 }
 0x3e4   : > { %1817 = vpow2.f32 %v1214_v33 }
 0x3e6   : > { %v2414_v9 = vpop.xlane.xlu0 %1036  ;;  %v1046_v63 = vpop.xlane.xlu2 %1045 }
 0x3e7   : > { %v1128_v62 = vsub.f32 %v2294_v5, %v1046_v63  ;;  %v2417_v0 = vpop.xlane.xlu1 %1027  ;;  %v1129_v15 = vsub.f32 %v2296_v6, %v1046_v63 }
 0x3e8   : > { %v2420_v34 = vpop.f32.mrf.mxu2  ;;  %v2422_v29 = vpop.f32.mrf.mxu3 }
 0x3e9   : > { %v1089_v56 = vmax.f32 %v2420_v34, %v2422_v29  ;;  %v1216_v41 = vmul.f32 1.442695, %v1128_v62  ;;  %v1218_v35 = vmul.f32 1.442695, %v1129_v15  ;;  %v2428_v5 = vpop.eup %1815 }
 0x3ea   : > { %v2430_v40 = vpop.eup %1817 }
 0x3eb   : > { %1327 = vadd.xlane.f32.xlu1 %v1326_v61  ;;  %1090 = vmax.xlane.f32.xlu0 %v1089_v56  ;;  %1819 = vpow2.f32 %v1216_v41  ;;  %v1329_v15 = vadd.f32 %v2430_v40, %v2428_v5 }
 0x3ec   : > { %1821 = vpow2.f32 %v1218_v35 }
 0x3ee   : > { %v2432_v33 = vpop.xlane.xlu0 %1030 }
 0x3ef   : > { %v2434_v6 = vpop.xlane.xlu1 %1021 }
 0x3f0   : > { %v2436_v63 = vpop.f32.mrf.mxu2  ;;  %v2438_v1 = vpop.f32.mrf.mxu3 }
 0x3f1   : > { %v1092_v62 = vmax.f32 %v2436_v63, %v2438_v1  ;;  %v2444_v61 = vpop.eup %1819 }
 0x3f2   : > { %2989 = vst [vmem:[#allocation23_spill] sm:$0xff] %v2444_v61  ;;  %v2446_v56 = vpop.eup %1821 }
 0x3f3   : > { %1093 = vmax.xlane.f32.xlu1 %v1092_v62  ;;  %1330 = vadd.xlane.f32.xlu0 %v1329_v15  ;;  %2990 = vst [vmem:[#allocation24_spill] sm:$0xff] %v2446_v56  ;;  %v1332_v21 = vadd.f32 %v2446_v56, %v2444_v61 }
 0x3f6   : > { %v2448_v41 = vpop.xlane.xlu0 %1024 }
 0x3f7   : > { %2991 = vst [vmem:[#allocation25_spill] sm:$0xff] %v2448_v41  ;;  %v2450_v58 = vpop.xlane.xlu1 %1015 }
 0x3f8   : > { %v2452_v35 = vpop.f32.mrf.mxu2  ;;  %v2454_v22 = vpop.f32.mrf.mxu3 }
 0x3f9   : > { %v1095_v46 = vmax.f32 %v2452_v35, %v2454_v22 }
 0x3fb   : > { %1333 = vadd.xlane.f32.xlu1 %v1332_v21  ;;  %1096 = vmax.xlane.f32.xlu0 %v1095_v46 }
 0x3fe   : > { %v2460_v62 = vpop.xlane.xlu0 %1018 }
 0x3ff   : > { %2992 = vst [vmem:[#allocation26_spill] sm:$0xff] %v2460_v62  ;;  %v2462_v15 = vpop.xlane.xlu1 %1009 }
 0x400   : > { %v2464_v51 = vpop.f32.mrf.mxu2  ;;  %v2466_v19 = vpop.f32.mrf.mxu3 }
 0x401   : > { %v1098_v39 = vmax.f32 %v2464_v51, %v2466_v19 }
 0x403   : > { %1099 = vmax.xlane.f32.xlu1 %v1098_v39 }
 0x406   : > { %v1013_v26 = vpop.xlane.xlu0 %1012 }
 0x407   : > { %v2470_v25 = vpop.xlane.xlu1 %1054  ;;  %v1106_v56 = vsub.f32 %v2244_v47, %v1013_v26  ;;  %v1107_v21 = vsub.f32 %v2234_v43, %v1013_v26 }
 0x409   : > { %v1172_v46 = vmul.f32 1.442695, %v1106_v56  ;;  %v1174_v61 = vmul.f32 1.442695, %v1107_v21 }
 0x40b   : > { %1823 = vpow2.f32 %v1172_v46 }
 0x40c   : > { %1825 = vpow2.f32 %v1174_v61 }
 0x40e   : > { %v1049_v62 = vpop.xlane.xlu0 %1048 }
 0x40f   : > { %v2474_v50 = vpop.xlane.xlu1 %1057  ;;  %v1130_v59 = vsub.f32 %v2306_v11, %v1049_v62  ;;  %v1131_v41 = vsub.f32 %v2308_v12, %v1049_v62 }
 0x411   : > { %v1220_v8 = vmul.f32 1.442695, %v1130_v59  ;;  %v2478_v39 = vpop.eup %1823  ;;  %v1222_v7 = vmul.f32 1.442695, %v1131_v41 }
 0x412   : > { %2993 = vst [vmem:[#allocation27_spill] sm:$0xff] %v2478_v39  ;;  %v2480_v42 = vpop.eup %1825 }
 0x413   : > { %2994 = vst [vmem:[#allocation28_spill] sm:$0xff] %v2480_v42  ;;  %1827 = vpow2.f32 %v1220_v8  ;;  %v1299_v43 = vadd.f32 %v2480_v42, %v2478_v39 }
 0x414   : > { %1829 = vpow2.f32 %v1222_v7  ;;  %v1120_v7 = vsub.f32 %v2258_v52, %v2400_v18  ;;  %v1122_v52 = vsub.f32 %v2264_v55, %v2414_v9  ;;  %v1117_v55 = vsub.f32 %v2260_v53, %v2417_v0 }
 0x415   : > { %1300 = vadd.xlane.f32.xlu2 %v1299_v43  ;;  %v1118_v53 = vsub.f32 %v2304_v10, %v2432_v33 }
 0x416   : > { %v1052_v47 = vpop.xlane.xlu0 %1051 }
 0x417   : > { %v1064_v26 = vpop.xlane.xlu1 %1063  ;;  %v1132_v61 = vsub.f32 %v2316_v16, %v1052_v47  ;;  %v1133_v11 = vsub.f32 %v2318_v17, %v1052_v47  ;;  %v1121_v16 = vsub.f32 %v2278_v60, %v2400_v18  ;;  %v2506_v60 = vpop.f32.mrf.mxu2 }
 0x418   : > { %v1140_v12 = vsub.f32 %v2348_v36, %v1064_v26  ;;  %v1141_v59 = vsub.f32 %v2350_v37, %v1064_v26  ;;  %v1200_v36 = vmul.f32 1.442695, %v1120_v7  ;;  %v1123_v26 = vsub.f32 %v2292_v4, %v2414_v9  ;;  %v2508_v18 = vpop.f32.mrf.mxu3 }
 0x419   : > { %v1224_v56 = vmul.f32 1.442695, %v1132_v61  ;;  %v2488_v41 = vpop.eup %1827  ;;  %v1226_v21 = vmul.f32 1.442695, %v1133_v11  ;;  %v1202_v37 = vmul.f32 1.442695, %v1121_v16  ;;  %v1116_v11 = vsub.f32 %v2288_v3, %v2417_v0 }
 0x41a   : > { %v1240_v62 = vmul.f32 1.442695, %v1140_v12  ;;  %v1242_v8 = vmul.f32 1.442695, %v1141_v59  ;;  %v2492_v46 = vpop.eup %1829  ;;  %v1204_v4 = vmul.f32 1.442695, %v1122_v52  ;;  %v1101_v9 = vmax.f32 %v2506_v60, %v2508_v18 }
 0x41b   : > { %1831 = vpow2.f32 %v1224_v56  ;;  %v1335_v17 = vadd.f32 %v2492_v46, %v2488_v41  ;;  %v1194_v3 = vmul.f32 1.442695, %v1117_v55  ;;  %v1112_v7 = vsub.f32 %v2262_v54, %v2434_v6 }
 0x41c   : > { %1833 = vpow2.f32 %v1240_v62  ;;  %v1206_v62 = vmul.f32 1.442695, %v1123_v26  ;;  %v1113_v16 = vsub.f32 %v2246_v48, %v2434_v6  ;;  %v1135_v55 = vsub.f32 %v2326_v24, %v2470_v25 }
 0x41d   : > { %1835 = vpow2.f32 %v1242_v8  ;;  %1336 = vadd.xlane.f32.xlu0 %v1335_v17  ;;  %v1192_v8 = vmul.f32 1.442695, %v1116_v11  ;;  %v1119_v17 = vsub.f32 %v2266_v27, %v2432_v33  ;;  %v1184_v52 = vmul.f32 1.442695, %v1112_v7 }
 0x41e   : > { %1837 = vpow2.f32 %v1226_v21  ;;  %v1186_v11 = vmul.f32 1.442695, %v1113_v16  ;;  %v1134_v33 = vsub.f32 %v2324_v23, %v2470_v25 }
 0x41f   : > { %1839 = vpow2.f32 %v1200_v36  ;;  %v1196_v36 = vmul.f32 1.442695, %v1118_v53  ;;  %v1198_v48 = vmul.f32 1.442695, %v1119_v17  ;;  %v2568_v53 = vpop.xlane.xlu0 %1066 }
 0x420   : > { %1841 = vpow2.f32 %v1202_v37  ;;  %v1059_v37 = vmax.f32 %v2340_v30, %v2342_v31 }
 0x421   : > { %v2498_v43 = vpop.eup %1831  ;;  %1843 = vpow2.f32 %v1204_v4 }
 0x422   : > { %v2502_v47 = vpop.eup %1833  ;;  %1845 = vpow2.f32 %v1206_v62 }
 0x423   : > { %2995 = vst [vmem:[#allocation29_spill] sm:$0xff] %v2502_v47  ;;  %v2510_v61 = vpop.eup %1835  ;;  %1847 = vpow2.f32 %v1192_v8  ;;  %v1230_v8 = vmul.f32 1.442695, %v1135_v55 }
 0x424   : > { %2996 = vst [vmem:[#allocation30_spill] sm:$0xff] %v2510_v61  ;;  %v2514_v12 = vpop.eup %1837  ;;  %v1350_v59 = vadd.f32 %v2510_v61, %v2502_v47  ;;  %1849 = vpow2.f32 %v1194_v3 }
 0x425   : > { %v1338_v56 = vadd.f32 %v2514_v12, %v2498_v43  ;;  %1102 = vmax.xlane.f32.xlu0 %v1101_v9  ;;  %v2524_v21 = vpop.eup %1839  ;;  %1851 = vpow2.f32 %v1196_v36 }
 0x426   : > { %1351 = vadd.xlane.f32.xlu2 %v1350_v59  ;;  %v2528_v0 = vpop.eup %1841  ;;  %1853 = vpow2.f32 %v1184_v52  ;;  %v2570_v7 = vpop.xlane.xlu1 %1069 }
 0x427   : > { %1339 = vadd.xlane.f32.xlu1 %v1338_v56  ;;  %v1320_v10 = vadd.f32 %v2528_v0, %v2524_v21  ;;  %v2540_v26 = vpop.eup %1843  ;;  %1855 = vpow2.f32 %v1186_v11  ;;  %v1228_v56 = vmul.f32 1.442695, %v1134_v33 }
 0x428   : > { %v2542_v54 = vpop.eup %1845  ;;  %1857 = vpow2.f32 %v1198_v48 }
 0x429   : > { %v2544_v6 = vpop.eup %1847  ;;  %v1323_v59 = vadd.f32 %v2542_v54, %v2540_v26  ;;  %1859 = vpow2.f32 %v1228_v56 }
 0x42a   : > { %v2546_v27 = vpop.eup %1849  ;;  %1861 = vpow2.f32 %v1230_v8 }
 0x42b   : > { %v1314_v4 = vadd.f32 %v2546_v27, %v2544_v6  ;;  %v2556_v9 = vpop.eup %1851 }
 0x42c   : > { %v2558_v62 = vpop.eup %1853 }
 0x42d   : > { %1060 = vmax.xlane.f32.xlu0 %v1059_v37  ;;  %v2560_v3 = vpop.eup %1855 }
 0x42e   : > { %v2562_v23 = vpop.eup %1857  ;;  %v1308_v25 = vadd.f32 %v2560_v3, %v2558_v62  ;;  %v2578_v37 = vpop.xlane.xlu0 %1072 }
 0x42f   : > { %1321 = vadd.xlane.f32.xlu1 %v1320_v10  ;;  %v1317_v24 = vadd.f32 %v2562_v23, %v2556_v9  ;;  %v2572_v16 = vpop.eup %1859 }
 0x430   : > { %v2574_v17 = vpop.eup %1861 }
 0x431   : > { %v1341_v36 = vadd.f32 %v2574_v17, %v2572_v16 }
 0x435   : > { %1324 = vadd.xlane.f32.xlu0 %v1323_v59 }
 0x436   : > { %v2580_v10 = vpop.xlane.xlu1 %1075 }
 0x437   : > { %1315 = vadd.xlane.f32.xlu1 %v1314_v4 }
 0x43d   : > { %1318 = vadd.xlane.f32.xlu0 %v1317_v24 }
 0x43e   : > { %v2582_v52 = vpop.xlane.xlu0 %1078 }
 0x43f   : > { %1309 = vadd.xlane.f32.xlu1 %v1308_v25 }
 0x445   : > { %1342 = vadd.xlane.f32.xlu0 %v1341_v36 }
 0x446   : > { %v2584_v11 = vpop.xlane.xlu1 %1081 }
 0x44e   : > { %v2586_v48 = vpop.xlane.xlu0 %1084 }
 0x456   : > { %v1088_v33 = vpop.xlane.xlu1 %1087 }
 0x457   : > { %v1156_v55 = vsub.f32 %v2404_v57, %v1088_v33  ;;  %v1157_v59 = vsub.f32 %v2406_v32, %v1088_v33 }
 0x459   : > { %v1272_v4 = vmul.f32 1.442695, %v1156_v55  ;;  %v1274_v56 = vmul.f32 1.442695, %v1157_v59 }
 0x45b   : > { %1863 = vpow2.f32 %v1272_v4 }
 0x45c   : > { %1865 = vpow2.f32 %v1274_v56 }
 0x45e   : > { %v1328_v8 = vpop.xlane.xlu1 %1327  ;;  %v1091_v24 = vpop.xlane.xlu0 %1090 }
 0x45f   : > { %v1158_v25 = vsub.f32 %v2420_v34, %v1091_v24  ;;  %v1159_v36 = vsub.f32 %v2422_v29, %v1091_v24 }
 0x461   : > { %v2592_v61 = vpop.eup %1863  ;;  %v1276_v47 = vmul.f32 1.442695, %v1158_v25  ;;  %v1278_v42 = vmul.f32 1.442695, %v1159_v36 }
 0x462   : > { %v2594_v39 = vpop.eup %1865 }
 0x463   : > { %1867 = vpow2.f32 %v1276_v47  ;;  %v1374_v57 = vadd.f32 %v2594_v39, %v2592_v61 }
 0x464   : > { %1869 = vpow2.f32 %v1278_v42 }
 0x465   : > { %1871 = vrcp.f32 %v1328_v8  ;;  %1375 = vadd.xlane.f32.xlu1 %v1374_v57 }
 0x466   : > { %v1094_v32 = vpop.xlane.xlu1 %1093  ;;  %v1331_v33 = vpop.xlane.xlu0 %1330 }
 0x467   : > { %v1160_v55 = vsub.f32 %v2436_v63, %v1094_v32  ;;  %v1161_v34 = vsub.f32 %v2438_v1, %v1094_v32  ;;  %1873 = vrcp.f32 %v1331_v33 }
 0x469   : > { %v2600_v29 = vpop.eup %1867  ;;  %v1280_v59 = vmul.f32 1.442695, %v1160_v55  ;;  %v1282_v4 = vmul.f32 1.442695, %v1161_v34 }
 0x46a   : > { %v2602_v56 = vpop.eup %1869 }
 0x46b   : > { %v1872_v47 = vpop.eup %1871  ;;  %1875 = vpow2.f32 %v1280_v59  ;;  %v1377_v42 = vadd.f32 %v2602_v56, %v2600_v29 }
 0x46c   : > { %1877 = vpow2.f32 %v1282_v4  ;;  %v2609_v1 = vmul.f32 %v1872_v47, %v2410_v38  ;;  %v2615_v36 = vmul.f32 %v1872_v47, %v2412_v2 }
 0x46d   : > { %v1874_v8 = vpop.eup %1873  ;;  %1378 = vadd.xlane.f32.xlu0 %v1377_v42  ;;  %v1152_v42 = vsub.f32 %v2386_v20, %v2584_v11  ;;  %v1108_v20 = vsub.f32 %v2250_v49, %v2450_v58  ;;  %v1148_v49 = vsub.f32 %v2374_v13, %v2580_v10  ;;  %v2998_v13 = vld [vmem:[#allocation6_spill] sm:$0xff] }
 0x46e   : > { %v2606_v24 = vpop.xlane.xlu1 %1333  ;;  %v1097_v63 = vpop.xlane.xlu0 %1096  ;;  %v2612_v25 = vmul.f32 %v1874_v8, %v2428_v5  ;;  %v2618_v57 = vmul.f32 %v1874_v8, %v2430_v40 }
 0x46f   : > { %v1162_v32 = vsub.f32 %v2452_v35, %v1097_v63  ;;  %v1163_v33 = vsub.f32 %v2454_v22, %v1097_v63 }
 0x471   : > { %v2626_v34 = vpop.eup %1875  ;;  %v1284_v5 = vmul.f32 1.442695, %v1162_v32  ;;  %v1286_v59 = vmul.f32 1.442695, %v1163_v33  ;;  %v1153_v33 = vsub.f32 %v2388_v28, %v2584_v11  ;;  %v1176_v11 = vmul.f32 1.442695, %v1108_v20 }
 0x472   : > { %v2628_v4 = vpop.eup %1877 }
 0x473   : > { %1879 = vpow2.f32 %v1284_v5  ;;  %v1380_v40 = vadd.f32 %v2628_v4, %v2626_v34 }
 0x474   : > { %1881 = vpow2.f32 %v1286_v59 }
 0x475   : > { %1381 = vadd.xlane.f32.xlu1 %v1380_v40 }
 0x476   : > { %v1100_v2 = vpop.xlane.xlu1 %1099 }
 0x477   : > { %v1164_v22 = vsub.f32 %v2464_v51, %v1100_v2  ;;  %v1165_v35 = vsub.f32 %v2466_v19, %v1100_v2  ;;  %v1264_v51 = vmul.f32 1.442695, %v1152_v42  ;;  %v1266_v19 = vmul.f32 1.442695, %v1153_v33 }
 0x478   : > { %v1109_v2 = vsub.f32 %v2236_v44, %v2450_v58  ;;  %v1256_v58 = vmul.f32 1.442695, %v1148_v49 }
 0x479   : > { %v2634_v47 = vpop.eup %1879  ;;  %v1288_v8 = vmul.f32 1.442695, %v1164_v22  ;;  %v1290_v63 = vmul.f32 1.442695, %v1165_v35 }
 0x47a   : > { %v2638_v32 = vpop.eup %1881  ;;  %v1178_v22 = vmul.f32 1.442695, %v1109_v2 }
 0x47b   : > { %1883 = vpow2.f32 %v1288_v8  ;;  %v1383_v5 = vadd.f32 %v2638_v32, %v2634_v47  ;;  %v1149_v8 = vsub.f32 %v2376_v14, %v2580_v10 }
 0x47c   : > { %1885 = vpow2.f32 %v1290_v63 }
 0x47d   : > { %1384 = vadd.xlane.f32.xlu0 %v1383_v5  ;;  %1887 = vpow2.f32 %v1264_v51  ;;  %v1258_v63 = vmul.f32 1.442695, %v1149_v8  ;;  %v1104_v51 = vsub.f32 %v2240_v45, %v2462_v15  ;;  %v3001_v45 = vld [vmem:[#allocation17_spill] sm:$0xff] }
 0x47e   : > { %1889 = vpow2.f32 %v1266_v19  ;;  %v1105_v19 = vsub.f32 %v2998_v13, %v2462_v15  ;;  %v3002_v15 = vld [vmem:[#allocation18_spill] sm:$0xff] }
 0x47f   : > { %1891 = vpow2.f32 %v1176_v11  ;;  %v1168_v10 = vmul.f32 1.442695, %v1104_v51  ;;  %v1147_v49 = vsub.f32 %v3002_v15, %v2578_v37  ;;  %v3003_v51 = vld [vmem:[#allocation25_spill] sm:$0xff]  ;;  %v3004_v13 = vld [vmem:[#allocation10_spill] sm:$0xff]  ;;  %v3006_v15 = vld [vmem:[#allocation11_spill] sm:$0xff] }
 0x480   : > { %1893 = vpow2.f32 %v1178_v22  ;;  %v1170_v2 = vmul.f32 1.442695, %v1105_v19  ;;  %v1146_v22 = vsub.f32 %v3001_v45, %v2578_v37  ;;  %v1114_v19 = vsub.f32 %v3004_v13, %v3003_v51 }
 0x481   : > { %v2644_v59 = vpop.eup %1883  ;;  %1895 = vpow2.f32 %v1256_v58  ;;  %v1254_v55 = vmul.f32 1.442695, %v1147_v49 }
 0x482   : > { %v2648_v40 = vpop.eup %1885  ;;  %1897 = vpow2.f32 %v1258_v63 }
 0x483   : > { %v1386_v28 = vadd.f32 %v2648_v40, %v2644_v59  ;;  %v2654_v35 = vpop.eup %1887  ;;  %1899 = vpow2.f32 %v1168_v10 }
 0x484   : > { %v2656_v42 = vpop.eup %1889  ;;  %1901 = vpow2.f32 %v1170_v2  ;;  %v3005_v2 = vld [vmem:[#allocation8_spill] sm:$0xff] }
 0x485   : > { %1387 = vadd.xlane.f32.xlu1 %v1386_v28  ;;  %2997 = vst [vmem:[#allocation31_spill] sm:$0xff] %v2656_v42  ;;  %v1368_v44 = vadd.f32 %v2656_v42, %v2654_v35  ;;  %v2664_v33 = vpop.eup %1891  ;;  %v1115_v45 = vsub.f32 %v3005_v2, %v3003_v51 }
 0x486   : > { %v2666_v5 = vpop.eup %1893 }
 0x487   : > { %v1302_v14 = vadd.f32 %v2666_v5, %v2664_v33  ;;  %v2676_v28 = vpop.eup %1895  ;;  %v1190_v13 = vmul.f32 1.442695, %v1115_v45 }
 0x488   : > { %2999 = vst [vmem:[#allocation6_spill] sm:$0xff] %v2676_v28  ;;  %v2678_v11 = vpop.eup %1897 }
 0x489   : > { %3000 = vst [vmem:[#allocation32_spill] sm:$0xff] %v2678_v11  ;;  %v1362_v63 = vadd.f32 %v2678_v11, %v2676_v28  ;;  %v2692_v37 = vpop.eup %1899 }
 0x48d   : > { %1369 = vadd.xlane.f32.xlu1 %v1368_v44 }
 0x490   : > { %v2672_v20 = vpop.xlane.xlu0 %1336 }
 0x495   : > { %1303 = vadd.xlane.f32.xlu1 %v1302_v14  ;;  %v1252_v14 = vmul.f32 1.442695, %v1146_v22  ;;  %v3007_v22 = vld [vmem:[#allocation12_spill] sm:$0xff] }
 0x498   : > { %v1103_v8 = vpop.xlane.xlu0 %1102 }
 0x499   : > { %v1166_v44 = vsub.f32 %v2506_v60, %v1103_v8  ;;  %v1167_v58 = vsub.f32 %v2508_v18, %v1103_v8  ;;  %v2694_v60 = vpop.eup %1901  ;;  %v1188_v18 = vmul.f32 1.442695, %v1114_v19  ;;  %v1136_v8 = vsub.f32 %v3006_v15, %v2474_v50 }
 0x49a   : > { %v1296_v51 = vadd.f32 %v2694_v60, %v2692_v37 }
 0x49b   : > { %v1292_v10 = vmul.f32 1.442695, %v1166_v44  ;;  %v1294_v38 = vmul.f32 1.442695, %v1167_v58  ;;  %v1137_v44 = vsub.f32 %v3007_v22, %v2474_v50 }
 0x49d   : > { %1363 = vadd.xlane.f32.xlu1 %v1362_v63  ;;  %1903 = vpow2.f32 %v1292_v10  ;;  %v3008_v10 = vld [vmem:[#allocation21_spill] sm:$0xff] }
 0x49e   : > { %1905 = vpow2.f32 %v1294_v38  ;;  %v1232_v38 = vmul.f32 1.442695, %v1136_v8 }
 0x49f   : > { %1907 = vpow2.f32 %v1252_v14  ;;  %v1154_v14 = vsub.f32 %v3008_v10, %v2586_v48  ;;  %v3014_v10 = vld [vmem:[#allocation9_spill] sm:$0xff] }
 0x4a0   : > { %1909 = vpow2.f32 %v1254_v55  ;;  %v1061_v58 = vpop.xlane.xlu0 %1060  ;;  %v1234_v55 = vmul.f32 1.442695, %v1137_v44 }
 0x4a1   : > { %v1138_v63 = vsub.f32 %v2340_v30, %v1061_v58  ;;  %v1139_v49 = vsub.f32 %v2342_v31, %v1061_v58  ;;  %1911 = vpow2.f32 %v1188_v18  ;;  %v3009_v30 = vld [vmem:[#allocation22_spill] sm:$0xff]  ;;  %v1268_v22 = vmul.f32 1.442695, %v1154_v14  ;;  %v3016_v14 = vld [vmem:[#allocation7_spill] sm:$0xff] }
 0x4a2   : > { %1913 = vpow2.f32 %v1190_v13  ;;  %v1155_v31 = vsub.f32 %v3009_v30, %v2586_v48 }
 0x4a3   : > { %v2704_v19 = vpop.eup %1903  ;;  %v1236_v2 = vmul.f32 1.442695, %v1138_v63  ;;  %v1238_v45 = vmul.f32 1.442695, %v1139_v49 }
 0x4a4   : > { %v2708_v50 = vpop.eup %1905  ;;  %v1270_v13 = vmul.f32 1.442695, %v1155_v31 }
 0x4a5   : > { %1297 = vadd.xlane.f32.xlu1 %v1296_v51  ;;  %v2712_v15 = vpop.eup %1907  ;;  %1915 = vpow2.f32 %v1236_v2  ;;  %v1389_v18 = vadd.f32 %v2708_v50, %v2704_v19  ;;  %v3013_v51 = vld [vmem:[#allocation26_spill] sm:$0xff] }
 0x4a6   : > { %3010 = vst [vmem:[#allocation17_spill] sm:$0xff] %v2712_v15  ;;  %v2716_v8 = vpop.eup %1909  ;;  %1917 = vpow2.f32 %v1238_v45  ;;  %v1110_v2 = vsub.f32 %v3014_v10, %v3013_v51  ;;  %v1111_v45 = vsub.f32 %v3016_v14, %v3013_v51  ;;  %v3019_v14 = vld [vmem:[#allocation19_spill] sm:$0xff] }
 0x4a7   : > { %3011 = vst [vmem:[#allocation18_spill] sm:$0xff] %v2716_v8  ;;  %1919 = vpow2.f32 %v1232_v38  ;;  %1390 = vadd.xlane.f32.xlu0 %v1389_v18  ;;  %v2718_v58 = vpop.eup %1911  ;;  %v1359_v48 = vadd.f32 %v2716_v8, %v2712_v15  ;;  %v1150_v15 = vsub.f32 %v3019_v14, %v2582_v52  ;;  %v3022_v14 = vld [vmem:[#allocation16_spill] sm:$0xff] }
 0x4a8   : > { %1921 = vpow2.f32 %v1234_v55  ;;  %v2720_v44 = vpop.xlane.xlu0 %1324  ;;  %v2724_v63 = vpop.eup %1913  ;;  %v1180_v8 = vmul.f32 1.442695, %v1110_v2  ;;  %v3020_v2 = vld [vmem:[#allocation20_spill] sm:$0xff] }
 0x4a9   : > { %1923 = vpow2.f32 %v1268_v22  ;;  %v1311_v30 = vadd.f32 %v2724_v63, %v2718_v58  ;;  %v1182_v22 = vmul.f32 1.442695, %v1111_v45 }
 0x4aa   : > { %1925 = vpow2.f32 %v1270_v13 }
 0x4ab   : > { %v2726_v49 = vpop.eup %1915  ;;  %1927 = vpow2.f32 %v1180_v8 }
 0x4ac   : > { %3012 = vst [vmem:[#allocation25_spill] sm:$0xff] %v2726_v49  ;;  %v2730_v38 = vpop.eup %1917  ;;  %1929 = vpow2.f32 %v1182_v22 }
 0x4ad   : > { %1360 = vadd.xlane.f32.xlu1 %v1359_v48  ;;  %3015 = vst [vmem:[#allocation10_spill] sm:$0xff] %v2730_v38  ;;  %v2734_v55 = vpop.eup %1919  ;;  %v1347_v31 = vadd.f32 %v2730_v38, %v2726_v49  ;;  %v1260_v38 = vmul.f32 1.442695, %v1150_v15 }
 0x4ae   : > { %3017 = vst [vmem:[#allocation8_spill] sm:$0xff] %v2734_v55  ;;  %v2740_v18 = vpop.eup %1921 }
 0x4af   : > { %3018 = vst [vmem:[#allocation11_spill] sm:$0xff] %v2740_v18  ;;  %1312 = vadd.xlane.f32.xlu0 %v1311_v30  ;;  %1348 = vadd.xlane.f32.xlu2 %v1347_v31  ;;  %v2744_v10 = vpop.eup %1923  ;;  %v1344_v13 = vadd.f32 %v2740_v18, %v2734_v55  ;;  %v1151_v30 = vsub.f32 %v3020_v2, %v2582_v52  ;;  %v1340_v31 = vpop.xlane.xlu1 %1339 }
 0x4b0   : > { %v2742_v48 = vpop.xlane.xlu0 %1318  ;;  %v2748_v51 = vpop.eup %1925  ;;  %1931 = vrcp.f32 %v1340_v31  ;;  %v1145_v52 = vsub.f32 %v3022_v14, %v2570_v7 }
 0x4b1   : > { %v1371_v45 = vadd.f32 %v2748_v51, %v2744_v10  ;;  %v1262_v49 = vmul.f32 1.442695, %v1151_v30  ;;  %v2756_v55 = vpop.eup %1927 }
 0x4b2   : > { %v2758_v8 = vpop.eup %1929 }
 0x4b3   : > { %v1305_v15 = vadd.f32 %v2758_v8, %v2756_v55 }
 0x4b5   : > { %1345 = vadd.xlane.f32.xlu1 %v1344_v13  ;;  %v3021_v13 = vld [vmem:[#allocation15_spill] sm:$0xff] }
 0x4b6   : > { %v1144_v22 = vsub.f32 %v3021_v13, %v2570_v7  ;;  %v1932_v2 = vpop.eup %1931 }
 0x4b7   : > { %1372 = vadd.xlane.f32.xlu0 %v1371_v45  ;;  %v1322_v30 = vpop.xlane.xlu1 %1321  ;;  %v1452_v13 = vmul.f32 %v1932_v2, %v2498_v43  ;;  %v1453_v11 = vmul.f32 %v1932_v2, %v2514_v12 }
 0x4b8   : > { %v1343_v18 = vpop.xlane.xlu0 %1342  ;;  %v1248_v45 = vmul.f32 1.442695, %v1144_v22  ;;  %v3023_v22 = vld [vmem:[#allocation13_spill] sm:$0xff] }
 0x4b9   : > { %1933 = vrcp.f32 %v1343_v18  ;;  %v1250_v18 = vmul.f32 1.442695, %v1145_v52  ;;  %v1142_v52 = vsub.f32 %v3023_v22, %v2568_v53 }
 0x4ba   : > { %1935 = vpow2.f32 %v1260_v38 }
 0x4bb   : > { %1937 = vpow2.f32 %v1262_v49 }
 0x4bc   : > { %1939 = vrcp.f32 %v2672_v20 }
 0x4bd   : > { %1941 = vrcp.f32 %v2606_v24  ;;  %v3024_v24 = vld [vmem:[#allocation14_spill] sm:$0xff] }
 0x4be   : > { %1943 = vpow2.f32 %v1248_v45  ;;  %v1143_v43 = vsub.f32 %v3024_v24, %v2568_v53  ;;  %v3027_v24 = vpack.c.bf16 %v2612_v25, %v2609_v1 }
 0x4bf   : > { %v1934_v31 = vpop.eup %1933  ;;  %1306 = vadd.xlane.f32.xlu0 %v1305_v15  ;;  %1945 = vpow2.f32 %v1250_v18 }
 0x4c0   : > { %v1454_v7 = vmul.f32 %v1934_v31, %v2572_v16  ;;  %v1455_v49 = vmul.f32 %v1934_v31, %v2574_v17  ;;  %v2772_v38 = vpop.eup %1935  ;;  %v1246_v15 = vmul.f32 1.442695, %v1143_v43  ;;  %v1316_v31 = vpop.xlane.xlu1 %1315  ;;  %v3028_v43 = vpack.c.bf16 %v2618_v57, %v2615_v36 }
 0x4c1   : > { %v2774_v20 = vpop.eup %1937 }
 0x4c2   : > { %v1504_v14 = vpack.c.bf16 %v1454_v7, %v1452_v13  ;;  %v1505_v28 = vpack.c.bf16 %v1455_v49, %v1453_v11  ;;  %v1940_v42 = vpop.eup %1939  ;;  %v1365_v16 = vadd.f32 %v2774_v20, %v2772_v38  ;;  %v1244_v11 = vmul.f32 1.442695, %v1142_v52  ;;  %v3025_v13 = vld [vmem:[#allocation23_spill] sm:$0xff]  ;;  %v3026_v7 = vld [vmem:[#allocation24_spill] sm:$0xff] }
 0x4c3   : > { %v1942_v12 = vpop.eup %1941  ;;  %v1450_v17 = vmul.f32 %v1940_v42, %v2488_v41  ;;  %v1451_v2 = vmul.f32 %v1940_v42, %v2492_v46 }
 0x4c4   : > { %1522 = vmatpush.bf16.xpose.msra.mxu0 %v1504_v14  ;;  %1535 = vmatpush.bf16.xpose.msrb.mxu1 %v1505_v28  ;;  %v1448_v45 = vmul.f32 %v1942_v12, %v3025_v13  ;;  %v1449_v49 = vmul.f32 %v1942_v12, %v3026_v7  ;;  %v2786_v53 = vpop.eup %1943  ;;  %1947 = vpow2.f32 %v1244_v11 }
 0x4c5   : > { %v2788_v18 = vpop.eup %1945  ;;  %1949 = vpow2.f32 %v1246_v15 }
 0x4c6   : > { %v1502_v28 = vpack.c.bf16 %v1450_v17, %v1448_v45  ;;  %v1503_v14 = vpack.c.bf16 %v1451_v2, %v1449_v49  ;;  %1951 = vrcp.f32 %v2720_v44  ;;  %v1356_v41 = vadd.f32 %v2788_v18, %v2786_v53 }
 0x4c7   : > { %1366 = vadd.xlane.f32.xlu0 %v1365_v16  ;;  %1953 = vrcp.f32 %v1322_v30 }
 0x4c8   : > { %v1310_v22 = vpop.xlane.xlu1 %1309  ;;  %1955 = vrcp.f32 %v2742_v48 }
 0x4c9   : > { %1957 = vrcp.f32 %v1316_v31 }
 0x4ca   : > { %v2793_v46 = vpop.eup %1947 }
 0x4cb   : > { %v2795_v42 = vpop.eup %1949 }
 0x4cc   : > { %1523 = vmatpush.bf16.xpose.msra.mxu0 %v1502_v28  ;;  %1536 = vmatpush.bf16.xpose.msrb.mxu1 %v1503_v14  ;;  %v1952_v52 = vpop.eup %1951  ;;  %v1353_v30 = vadd.f32 %v2795_v42, %v2793_v46 }
 0x4cd   : > { %v1954_v44 = vpop.eup %1953  ;;  %v1442_v12 = vmul.f32 %v1952_v52, %v2540_v26  ;;  %v1443_v16 = vmul.f32 %v1952_v52, %v2542_v54 }
 0x4ce   : > { %v1440_v17 = vmul.f32 %v1954_v44, %v2524_v21  ;;  %v1441_v1 = vmul.f32 %v1954_v44, %v2528_v0  ;;  %v1956_v57 = vpop.eup %1955 }
 0x4cf   : > { %1357 = vadd.xlane.f32.xlu0 %v1356_v41  ;;  %v1958_v48 = vpop.eup %1957  ;;  %v1438_v15 = vmul.f32 %v1956_v57, %v2556_v9  ;;  %v1439_v26 = vmul.f32 %v1956_v57, %v2562_v23 }
 0x4d0   : > { %v1498_v2 = vpack.c.bf16 %v1442_v12, %v1440_v17  ;;  %v1499_v36 = vpack.c.bf16 %v1443_v16, %v1441_v1  ;;  %v1436_v54 = vmul.f32 %v1958_v48, %v2544_v6  ;;  %v1437_v21 = vmul.f32 %v1958_v48, %v2546_v27 }
 0x4d2   : > { %v1496_v31 = vpack.c.bf16 %v1438_v15, %v1436_v54  ;;  %v1497_v0 = vpack.c.bf16 %v1439_v26, %v1437_v21 }
 0x4d4   : > { %1524 = vmatpush.bf16.xpose.msra.mxu0 %v3027_v24  ;;  %1537 = vmatpush.bf16.xpose.msrb.mxu1 %v3028_v43 }
 0x4d7   : > { %1354 = vadd.xlane.f32.xlu0 %v1353_v30 }
 0x4d8   : > { %v1376_v25 = vpop.xlane.xlu1 %1375 }
 0x4d9   : > { %1959 = vrcp.f32 %v1376_v25 }
 0x4dc   : > { %1525 = vmatpush.bf16.xpose.msra.mxu0 %v1498_v2  ;;  %1538 = vmatpush.bf16.xpose.msrb.mxu1 %v1499_v36  ;;  %v1301_v2 = vpop.xlane.xlu2 %1300 }
 0x4df   : > { %v1960_v13 = vpop.eup %1959 }
 0x4e0   : > { %v1379_v11 = vpop.xlane.xlu0 %1378  ;;  %v2815_v7 = vmul.f32 %v1960_v13, %v2592_v61  ;;  %v2821_v9 = vmul.f32 %v1960_v13, %v2594_v39 }
 0x4e1   : > { %1961 = vrcp.f32 %v1379_v11 }
 0x4e2   : > { %1963 = vrcp.f32 %v1310_v22 }
 0x4e4   : > { %1526 = vmatpush.bf16.xpose.msra.mxu0 %v1496_v31  ;;  %1539 = vmatpush.bf16.xpose.msrb.mxu1 %v1497_v0 }
 0x4e7   : > { %v1962_v45 = vpop.eup %1961 }
 0x4e8   : > { %v2818_v49 = vmul.f32 %v1962_v45, %v2600_v29  ;;  %v2824_v23 = vmul.f32 %v1962_v45, %v2602_v56  ;;  %v1382_v28 = vpop.xlane.xlu1 %1381  ;;  %v1964_v39 = vpop.eup %1963  ;;  %v3030_v45 = vld [vmem:[#allocation28_spill] sm:$0xff] }
 0x4e9   : > { %v1432_v30 = vmul.f32 %v1964_v39, %v2558_v62  ;;  %v1433_v16 = vmul.f32 %v1964_v39, %v2560_v3 }
 0x4ea   : > { %v1516_v6 = vpack.c.bf16 %v2818_v49, %v2815_v7  ;;  %v1517_v27 = vpack.c.bf16 %v2824_v23, %v2821_v9 }
 0x4f0   : > { %v1385_v41 = vpop.xlane.xlu0 %1384 }
 0x4f8   : > { %v1388_v14 = vpop.xlane.xlu1 %1387 }
 0x500   : > { %v2830_v61 = vpop.xlane.xlu1 %1369 }
 0x508   : > { %v1304_v29 = vpop.xlane.xlu1 %1303 }
 0x510   : > { %v2832_v56 = vpop.xlane.xlu1 %1363 }
 0x518   : > { %v1298_v36 = vpop.xlane.xlu1 %1297 }
 0x51a   : > { %v1391_v52 = vpop.xlane.xlu0 %1390 }
 0x522   : > { %v1313_v24 = vpop.xlane.xlu0 %1312 }
 0x523   : > { %1965 = vrcp.f32 %v1313_v24 }
 0x524   : > { %1967 = vrcp.f32 %v1304_v29 }
 0x529   : > { %v1966_v43 = vpop.eup %1965 }
 0x52a   : > { %v2834_v44 = vpop.xlane.xlu0 %1372  ;;  %v1434_v12 = vmul.f32 %v1966_v43, %v2718_v58  ;;  %v1435_v17 = vmul.f32 %v1966_v43, %v2724_v63  ;;  %v1968_v57 = vpop.eup %1967 }
 0x52b   : > { %v1428_v58 = vmul.f32 %v1968_v57, %v2664_v33  ;;  %v1429_v63 = vmul.f32 %v1968_v57, %v2666_v5  ;;  %v3029_v5 = vld [vmem:[#allocation27_spill] sm:$0xff] }
 0x52c   : > { %v1494_v1 = vpack.c.bf16 %v1434_v12, %v1432_v30  ;;  %v1495_v25 = vpack.c.bf16 %v1435_v17, %v1433_v16 }
 0x52e   : > { %1527 = vmatpush.bf16.xpose.msra.mxu0 %v1494_v1  ;;  %1540 = vmatpush.bf16.xpose.msrb.mxu1 %v1495_v25 }
 0x532   : > { %v1307_v22 = vpop.xlane.xlu0 %1306 }
 0x533   : > { %1969 = vrcp.f32 %v1307_v22  ;;  %v3033_v22 = vld [vmem:[#allocation31_spill] sm:$0xff] }
 0x534   : > { %1971 = vrcp.f32 %v1301_v2 }
 0x535   : > { %1973 = vrcp.f32 %v1298_v36 }
 0x536   : > { %1975 = vrcp.f32 %v1391_v52 }
 0x537   : > { %1977 = vrcp.f32 %v1388_v14 }
 0x538   : > { %1979 = vrcp.f32 %v1385_v41 }
 0x539   : > { %v1970_v62 = vpop.eup %1969  ;;  %1981 = vrcp.f32 %v1382_v28  ;;  %v3031_v28 = vld [vmem:[#allocation4_spill] sm:$0xff] }
 0x53a   : > { %v1430_v3 = vmul.f32 %v1970_v62, %v2756_v55  ;;  %v1431_v48 = vmul.f32 %v1970_v62, %v2758_v8  ;;  %v1972_v11 = vpop.eup %1971  ;;  %v2856_v30 = vpack.c.bf16 %v3031_v28, %v3031_v28  ;;  %1983 = vrcp.f32 %v2834_v44 }
 0x53b   : > { %v1974_v54 = vpop.eup %1973  ;;  %v1426_v8 = vmul.f32 %v1972_v11, %v3029_v5  ;;  %v1427_v14 = vmul.f32 %v1972_v11, %v3030_v45  ;;  %1985 = vrcp.f32 %v2830_v61  ;;  %v3039_v45 = vld [vmem:[#allocation30_spill] sm:$0xff] }
 0x53c   : > { %v1492_v15 = vpack.c.bf16 %v1430_v3, %v1428_v58  ;;  %v1493_v26 = vpack.c.bf16 %v1431_v48, %v1429_v63  ;;  %v1976_v21 = vpop.eup %1975  ;;  %v1424_v0 = vmul.f32 %v1974_v54, %v2692_v37  ;;  %v1425_v13 = vmul.f32 %v1974_v54, %v2694_v60  ;;  %v1352_v63 = vpop.xlane.xlu2 %1351 }
 0x53d   : > { %v1978_v31 = vpop.eup %1977  ;;  %v1486_v33 = vmul.f32 %v1976_v21, %v2704_v19  ;;  %v1487_v55 = vmul.f32 %v1976_v21, %v2708_v50 }
 0x53e   : > { %1528 = vmatpush.bf16.xpose.msra.mxu0 %v1492_v15  ;;  %1541 = vmatpush.bf16.xpose.msrb.mxu1 %v1493_v26  ;;  %v1484_v52 = vmul.f32 %v1978_v31, %v2644_v59  ;;  %v1485_v29 = vmul.f32 %v1978_v31, %v2648_v40  ;;  %v1490_v24 = vpack.c.bf16 %v1426_v8, %v1424_v0  ;;  %v1980_v37 = vpop.eup %1979  ;;  %v3032_v59 = vld [vmem:[#allocation5_spill] sm:$0xff]  ;;  %v3037_v26 = vld [vmem:[#allocation18_spill] sm:$0xff] }
 0x53f   : > { %v1491_v39 = vpack.c.bf16 %v1427_v14, %v1425_v13  ;;  %v1982_v60 = vpop.eup %1981  ;;  %v1482_v19 = vmul.f32 %v1980_v37, %v2634_v47  ;;  %v1483_v50 = vmul.f32 %v1980_v37, %v2638_v32  ;;  %v2860_v40 = vpack.c.bf16 %v3032_v59, %v3032_v59  ;;  %v1367_v32 = vpop.xlane.xlu0 %1366  ;;  %v3041_v37 = vld [vmem:[#allocation11_spill] sm:$0xff] }
 0x540   : > { %v1520_v41 = vpack.c.bf16 %v1486_v33, %v1484_v52  ;;  %v1521_v43 = vpack.c.bf16 %v1487_v55, %v1485_v29  ;;  %v1480_v12 = vmul.f32 %v1982_v60, %v2626_v34  ;;  %v1481_v16 = vmul.f32 %v1982_v60, %v2628_v4  ;;  %v1984_v1 = vpop.eup %1983 }
 0x541   : > { %v1986_v34 = vpop.eup %1985  ;;  %1987 = vrcp.f32 %v1367_v32  ;;  %v1474_v4 = vmul.f32 %v1984_v1, %v2744_v10  ;;  %v1475_v25 = vmul.f32 %v1984_v1, %v2748_v51  ;;  %v3034_v51 = vld [vmem:[#allocation6_spill] sm:$0xff] }
 0x542   : > { %v1518_v17 = vpack.c.bf16 %v1482_v19, %v1480_v12  ;;  %v1519_v47 = vpack.c.bf16 %v1483_v50, %v1481_v16  ;;  %1989 = vrcp.f32 %v2832_v56  ;;  %v1472_v61 = vmul.f32 %v1986_v34, %v2654_v35  ;;  %v3035_v56 = vld [vmem:[#allocation32_spill] sm:$0xff]  ;;  %v3042_v19 = vld [vmem:[#allocation25_spill] sm:$0xff] }
 0x543   : > { %v1473_v2 = vmul.f32 %v1986_v34, %v3033_v22 }
 0x544   : > { %v1514_v36 = vpack.c.bf16 %v1474_v4, %v1472_v61  ;;  %v1349_v33 = vpop.xlane.xlu2 %1348  ;;  %v3045_v61 = vld [vmem:[#allocation3_spill] sm:$0xff] }
 0x545   : > { %v1515_v7 = vpack.c.bf16 %v1475_v25, %v1473_v2  ;;  %v3044_v25 = vld [vmem:[#allocation2_spill] sm:$0xff] }
 0x546   : > { %1529 = vmatpush.bf16.xpose.msra.mxu0 %v1490_v24  ;;  %1542 = vmatpush.bf16.xpose.msrb.mxu1 %v1491_v39 }
 0x547   : > { %v1358_v44 = vpop.xlane.xlu0 %1357  ;;  %v1988_v49 = vpop.eup %1987 }
 0x548   : > { %v1990_v9 = vpop.eup %1989  ;;  %1991 = vrcp.f32 %v1358_v44  ;;  %v1470_v23 = vmul.f32 %v1988_v49, %v2772_v38  ;;  %v1471_v10 = vmul.f32 %v1988_v49, %v2774_v20  ;;  %v3036_v20 = vld [vmem:[#allocation17_spill] sm:$0xff]  ;;  %v2026_v49 = vmov 256.0  }
 0x549   : > { %v1469_v57 = vmul.f32 %v1990_v9, %v3035_v56  ;;  %v1587_v56 = vld [vmem:[%s2927_s7] sm:$0xf] }
 0x54b   : > { %v1513_v58 = vpack.c.bf16 %v1471_v10, %v1469_v57  ;;  %v1588_v57 = vld [vmem:[%s2928_s8] sm:$0xf] }
 0x54d   : > { %1530 = vmatmul.bf16.vlgmr.msra.gmra.mxu0 %v2856_v30  ;;  %1543 = vmatmul.bf16.vlgmr.msrb.gmra.mxu1 %v2860_v40 }
 0x54e   : > { %1548 = vmatpush.bf16.xpose.msrb.mxu0 %v1520_v41  ;;  %1561 = vmatpush.bf16.xpose.msra.mxu1 %v1521_v43  ;;  %v1992_v3 = vpop.eup %1991  ;;  %v3040_v41 = vld [vmem:[#allocation8_spill] sm:$0xff] }
 0x54f   : > { %v1355_v35 = vpop.xlane.xlu0 %1354  ;;  %v1464_v11 = vmul.f32 %v1992_v3, %v2786_v53  ;;  %v1465_v38 = vmul.f32 %v1992_v3, %v2788_v18  ;;  %v3038_v18 = vld [vmem:[#allocation29_spill] sm:$0xff] }
 0x550   : > { %v1613_v3 = vld [vmem:[%s2929_s9] sm:$0xff] }
 0x556   : > { %1549 = vmatpush.bf16.xpose.msrb.mxu0 %v1518_v17  ;;  %1562 = vmatpush.bf16.xpose.msra.mxu1 %v1519_v47 }
 0x55e   : > { %1550 = vmatpush.bf16.xpose.msrb.mxu0 %v1516_v6  ;;  %1563 = vmatpush.bf16.xpose.msra.mxu1 %v1517_v27  ;;  %v1361_v6 = vpop.xlane.xlu1 %1360  ;;  %v1468_v27 = vmul.f32 %v1990_v9, %v3034_v51 }
 0x55f   : > { %1993 = vrcp.f32 %v1361_v6 }
 0x560   : > { %v1512_v62 = vpack.c.bf16 %v1470_v23, %v1468_v27  ;;  %1995 = vrcp.f32 %v1355_v35 }
 0x561   : > { %1997 = vrcp.f32 %v1352_v63  ;;  %v1614_v63 = vld [vmem:[%s2930_s10] sm:$0xff] }
 0x565   : > { %v1994_v48 = vpop.eup %1993 }
 0x566   : > { %1551 = vmatpush.bf16.xpose.msrb.mxu0 %v1514_v36  ;;  %1564 = vmatpush.bf16.xpose.msra.mxu1 %v1515_v7  ;;  %v1466_v15 = vmul.f32 %v1994_v48, %v3036_v20  ;;  %v1467_v54 = vmul.f32 %v1994_v48, %v3037_v26  ;;  %v1346_v21 = vpop.xlane.xlu1 %1345  ;;  %v1996_v13 = vpop.eup %1995 }
 0x567   : > { %v1998_v55 = vpop.eup %1997  ;;  %1999 = vrcp.f32 %v1346_v21  ;;  %v1462_v5 = vmul.f32 %v1996_v13, %v2793_v46  ;;  %v1463_v53 = vmul.f32 %v1996_v13, %v2795_v42  ;;  %v3043_v46 = vld [vmem:[#allocation10_spill] sm:$0xff] }
 0x568   : > { %v1510_v31 = vpack.c.bf16 %v1466_v15, %v1464_v11  ;;  %v1511_v0 = vpack.c.bf16 %v1467_v54, %v1465_v38  ;;  %2001 = vrcp.f32 %v1349_v33  ;;  %v1460_v8 = vmul.f32 %v1998_v55, %v3038_v18 }
 0x569   : > { %v1461_v14 = vmul.f32 %v1998_v55, %v3039_v45  ;;  %2003 = vrcp.f32 %v2026_v49 }
 0x56a   : > { %v1508_v52 = vpack.c.bf16 %v1462_v5, %v1460_v8 }
 0x56b   : > { %v1509_v29 = vpack.c.bf16 %v1463_v53, %v1461_v14 }
 0x56d   : > { %v2000_v24 = vpop.eup %1999 }
 0x56e   : > { %1552 = vmatpush.bf16.xpose.msrb.mxu0 %v1512_v62  ;;  %1565 = vmatpush.bf16.xpose.msra.mxu1 %v1513_v58  ;;  %v2002_v39 = vpop.eup %2001  ;;  %v1456_v43 = vmul.f32 %v2000_v24, %v3040_v41  ;;  %v1457_v60 = vmul.f32 %v2000_v24, %v3041_v37 }
 0x56f   : > { %v1458_v50 = vmul.f32 %v2002_v39, %v3042_v19  ;;  %v1459_v28 = vmul.f32 %v2002_v39, %v3043_v46 }
 0x571   : > { %v1506_v42 = vpack.c.bf16 %v1458_v50, %v1456_v43  ;;  %v1507_v59 = vpack.c.bf16 %v1459_v28, %v1457_v60 }
 0x576   : > { %1553 = vmatpush.bf16.xpose.msrb.mxu0 %v1510_v31  ;;  %1566 = vmatpush.bf16.xpose.msra.mxu1 %v1511_v0 }
 0x57e   : > { %1554 = vmatpush.bf16.xpose.msrb.mxu0 %v1508_v52  ;;  %1567 = vmatpush.bf16.xpose.msra.mxu1 %v1509_v29 }
 0x586   : > { %1555 = vmatpush.bf16.xpose.msrb.mxu0 %v1506_v42  ;;  %1568 = vmatpush.bf16.xpose.msra.mxu1 %v1507_v59 }
 0x58d   : > { %1556 = vmatmul.bf16.vlgmr.msrb.gmra.mxu0 %v2856_v30  ;;  %1569 = vmatmul.bf16.vlgmr.msra.gmra.mxu1 %v2860_v40  ;;  %v2004_v30 = vpop.eup %2003 }
 0x58e   : > { %v1580_v40 = vmul.f32 256.0, %v2004_v30  ;;  %vm1584_vm12 = vweird.f32 %v2004_v30 }
 0x590   : > { %v1581_v6 = vsub.f32 1.0, %v1580_v40 }
 0x592   : > { %v1582_v9 = vmul.f32 %v2004_v30, %v1581_v6 }
 0x594   : > { %v1583_v23 = vadd.f32 %v2004_v30, %v1582_v9 }
 0x596   : > { %v1585_v10 = vsel %vm1584_vm12, %v2004_v30, %v1583_v23 }
 0x5ca   : > { %v1531_v12 = vpop.f32.mrf.mxu0  ;;  %v1544_v16 = vpop.f32.mrf.mxu1 }
 0x5cb   : > { %v1545_v32 = vadd.f32 %v1544_v16, %v1531_v12 }
 0x5cd   : > { %v1574_v44 = vadd.f32 %v1545_v32, %v3044_v25 }
 0x5d2   : > { %v1533_v17 = vpop.f32.mrf.mxu0  ;;  %v1546_v47 = vpop.f32.mrf.mxu1 }
 0x60a   : > { %v1557_v1 = vpop.f32.mrf.mxu0  ;;  %v1570_v34 = vpop.f32.mrf.mxu1 }
 0x60b   : > { %v1571_v4 = vadd.f32 %v1570_v34, %v1557_v1 }
 0x60d   : > { %v1575_v22 = vadd.f32 %v1571_v4, %v3045_v61 }
 0x60f   : > { %v1576_v2 = vadd.f32 %v1575_v22, %v1574_v44 }
 0x611   : > { %1577 = vadd.xlane.f32.xlu0 %v1576_v2 }
 0x612   : > { %v1559_v36 = vpop.f32.mrf.mxu0  ;;  %v1572_v7 = vpop.f32.mrf.mxu1 }
 0x684   : > { %v1578_v51 = vpop.xlane.xlu0 %1577 }
 0x685   : > { %v1586_v27 = vmul.f32 %v1585_v10, %v1578_v51 }
 0x687   : > { %1607 = vmatpush.msra.mxu0 %v1586_v27 }
 0x688   : > { %1781 = vmatmul.msk.f32.vlgmr.msra.gmra.mxu0 %vm652_vm11, %v1587_v56 }
 0x705   : > { %v1609_v35 = vpop.f32.mrf.mxu0 }
 0x706   : > { %v1610_v62 = vadd.f32 %v1609_v35, %v1588_v57 }
 0x708   : > { %v1612_v58 = vmax.f32 %v1610_v62, 0.0 }
 0x70a   : > { %1782 = vmatpush.msk.msrb.mxu1 %vm588_vm7, %v1612_v58 }
 0x70b   : > { %1783 = vmatmul.msk.f32.vlgmr.msrb.gmra.mxu1 %vm1615_vm13, %v1613_v3 }
 0x788   : > { %v1639_v48 = vpop.f32.mrf.mxu1 }
 0x789   : > { %v1640_v11 = vadd.f32 %v1639_v48, %v1614_v63 }
 0x78b   : > { %v1784_v38 = vmul.f32 -1.442695, %v1640_v11 }
 0x78d   : > { %2005 = vpow2.f32 %v1784_v38 }
 0x793   : > { %v2006_v20 = vpop.eup %2005 }
 0x794   : > { %v1645_v15 = vadd.f32 1.0, %v2006_v20 }
 0x796   : > { %2007 = vrcp.f32 %v1645_v15  ;;  %v1657_v31 = vand.u32 2147483648, %v1645_v15  ;;  %v1655_v13 = vand.u32 2147483647, %v1645_v15  ;;  %vm1651_vm15 = vweird.f32 %v1645_v15 }
 0x798   : > { %v1658_v55 = vor.u32 1.1754944e-38, %v1657_v31  ;;  %vm1656_vm1 = vcmp.eq.f32.partialorder %v1655_v13, 8.507059e+37 }
 0x79c   : > { %v2008_v26 = vpop.eup %2007 }
 0x79d   : > { %v1647_v54 = vmul.f32 %v2008_v26, %v1645_v15  ;;  %vm1652_vm14 = vweird.f32 %v2008_v26 }
 0x79e   : > { %vm1653_vm0 = vmor %vm1651_vm15, %vm1652_vm14 }
 0x79f   : > { %v1648_v21 = vsub.f32 1.0, %v1647_v54 }
 0x7a1   : > { %v1649_v0 = vmul.f32 %v2008_v26, %v1648_v21 }
 0x7a3   : > { %v1650_v33 = vadd.f32 %v2008_v26, %v1649_v0 }
 0x7a5   : > { %v1654_v5 = vsel %vm1653_vm0, %v2008_v26, %v1650_v33 }
 0x7a6   : > { %v1659_v53 = vsel %vm1656_vm1, %v1658_v55, %v1654_v5 }
 0x7a7   : > { %1663 = vperm.xlu1 %1809, %v1659_v53  }
 0x819   : > { %v1664_v18 = vpop.permute.xlu1 %1663 }
 0x81a   : > { %v1666_v8 = vmul.f32 %v1664_v18, %v1574_v44  ;;  %v1667_v45 = vmul.f32 %v1664_v18, %v1575_v22 }
 0x81c   : > { %1668 = vst [vmem:[%s386_s15] sm:$0xff] %v1666_v8 }
 0x81d   : > { %1669 = vst [vmem:[%s386_s15 + $0x8] sm:$0xff] %v1667_v45 }
 0x81e PF: > { %s21_s17 = sadd.s32 1, %s2015_s17  }
 0x81f   : > { %p18_p4 = scmp.ge.s32.totalorder %s21_s17, 4  }
 0x821   :  { %20 = sbr.rel (!%p18_p4) target bundleno = 1 (0x1), region = 101 }

</bundles_post_ra>
